<compile_context>
chip_gen: v7x
topology: tpu7x:2x2x1
jax: 0.10.0
libtpu: 0.0.40
codegen_flags: <defaults>
</compile_context>

<pallas_src>
from functools import partial

import jax
import jax.numpy as jnp
from jax.experimental import pallas as pl
from jax.experimental.pallas import tpu as pltpu


def _round_up(x, m):
    return (x + m - 1) // m * m


# ----------------------------- Pallas kernel --------------------------------

def _make_conv_kernel(tap_offsets, c_pad, k_pad, m_band, th, wp_pad, wo1):
    """One im2col-folded MXU matmul per (image, output-row-band) grid step."""
    n_taps = len(tap_offsets)
    k_raw = n_taps * c_pad

    def kernel(x_ref, w_ref, o_ref):
        # x_ref: [1, M_in, c_pad]   flattened zero-padded NHWC image, BN applied;
        #                           constant along the band axis -> stays resident.
        # w_ref: [k_pad, o_pad]     im2col-folded weights (grid-invariant).
        # o_ref: [1, th, wo1, o_pad] valid outputs for this row band (lane-dense).
        band_start = pl.multiple_of(pl.program_id(1) * m_band, m_band)

        # Build the im2col LHS in VMEM: tap (i, j) of the 2D window is the same
        # flattened image shifted by i*Wp_pad + j rows.  Concatenate the taps
        # along the lane axis and zero-pad the contraction dim up to k_pad.
        pieces = []
        for off in tap_offsets:
            start = band_start + off
            if off % 16 == 0:
                start = pl.multiple_of(start, 16)   # aligned vertical taps
            pieces.append(x_ref[0, pl.ds(start, m_band), :])
        if k_pad > k_raw:
            pieces.append(jnp.zeros((m_band, k_pad - k_raw), x_ref.dtype))
        lhs = jnp.concatenate(pieces, axis=-1)                 # [m_band, k_pad]

        # Single MXU matmul, f32 accumulation.
        acc = jnp.dot(lhs, w_ref[...], preferred_element_type=jnp.float32)

        # Keep only valid window positions (cols < wo1) of this band and store.
        out = acc.reshape(th, wp_pad, acc.shape[-1])[:, :wo1, :]
        o_ref[0] = out.astype(o_ref.dtype)

    return kernel


# ------------------------------ Python glue ---------------------------------

@partial(jax.jit, static_argnames=("stride", "padding", "eps", "compute_dtype"))
def basic_quant_conv2d(x, params, stride=1, padding=1, eps=1e-3,
                       compute_dtype=jnp.bfloat16):
    """Forward of BasicQuantConv2d: y = conv2d(bn(x)), bias=False, NCHW in/out."""
    w = params["weight"]
    N, C, H, W = x.shape
    O, _, kh, kw = w.shape

    # ---- BN (inference mode) affine, applied BEFORE zero padding --------------
    inv_std = 1.0 / jnp.sqrt(params["running_var"].astype(jnp.float32) + eps)
    scale = params["gamma"].astype(jnp.float32) * inv_std                   # [C]
    shift = (params["beta"].astype(jnp.float32)
             - params["running_mean"].astype(jnp.float32) * scale)          # [C]

    Hp, Wp = H + 2 * padding, W + 2 * padding
    Ho = (Hp - kh) // stride + 1
    Wo = (Wp - kw) // stride + 1
    Ho1 = Hp - kh + 1          # stride-1 valid output rows (what the kernel writes)
    Wo1 = Wp - kw + 1

    # Sublane-aligned flattened layout.
    Wp_pad = _round_up(Wp, 16)          # vertical tap offsets i*Wp_pad are aligned
    c_pad = _round_up(C, 8)
    o_pad = _round_up(O, 128)           # lane-dense output stores
    k_raw = kh * kw * c_pad
    k_pad = _round_up(k_raw, 128)       # contraction depth fed to the MXU

    # Output-row band tiling (second, parallel grid axis).
    th = max(1, min(Ho1, 256 // Wp_pad))
    n_hblk = -(-Ho1 // th)
    Ho1_pad = n_hblk * th
    m_band = th * Wp_pad
    max_off = (kh - 1) * Wp_pad + (kw - 1)
    M_in = _round_up(Ho1_pad * Wp_pad + max_off, 16)

    # One fused (jitted) HBM pass: NCHW->NHWC + BN affine + cast + zero pad +
    # flatten.  Affine is applied before the zero pad so pad values stay 0.
    x_nhwc = jnp.transpose(x, (0, 2, 3, 1)).astype(jnp.float32)
    xb = (x_nhwc * scale + shift).astype(compute_dtype)
    xp = jnp.pad(xb, ((0, 0), (padding, padding),
                      (padding, Wp_pad - W - padding), (0, c_pad - C)))
    xf = xp.reshape(N, Hp * Wp_pad, c_pad)
    xf = jnp.pad(xf, ((0, 0), (0, M_in - Hp * Wp_pad), (0, 0)))

    # im2col-folded weights: row (i*kw + j)*c_pad + c  <->  w[o, c, i, j].
    wt = jnp.transpose(w, (2, 3, 1, 0)).astype(jnp.float32)       # [kh, kw, C, O]
    wt = jnp.pad(wt, ((0, 0), (0, 0), (0, c_pad - C), (0, 0)))
    wt = wt.reshape(k_raw, O)
    wt = jnp.pad(wt, ((0, k_pad - k_raw), (0, o_pad - O))).astype(compute_dtype)

    tap_offsets = tuple(i * Wp_pad + j for i in range(kh) for j in range(kw))
    kernel = _make_conv_kernel(tap_offsets, c_pad, k_pad, m_band, th, Wp_pad, Wo1)

    # VMEM budget: double-buffered activation/output blocks, resident weights,
    # in-kernel im2col LHS + f32 accumulator.  The c_pad lane dim is padded to
    # 128 lanes in VMEM, so budget that (conservative).  Capped for v7x (64 MiB).
    bytes_c = jnp.dtype(compute_dtype).itemsize
    vmem_need = (2 * M_in * 128 * bytes_c
                 + 2 * k_pad * o_pad * bytes_c
                 + 2 * th * Wo1 * o_pad * bytes_c
                 + m_band * k_pad * bytes_c
                 + 2 * m_band * o_pad * 4)
    vmem_limit = min(int(vmem_need) + (8 << 20), 64 << 20)

    cost = pl.CostEstimate(
        flops=2 * N * Ho * Wo * kh * kw * C * O,
        transcendentals=0,
        bytes_accessed=int((xf.size + wt.size + N * Ho1_pad * Wo1 * o_pad)
                           * bytes_c))

    # TODO(synk): for very large feature maps, tile the flattened row axis with a
    #             halo via manual DMA double-buffering instead of keeping the whole
    #             image resident per step.
    out = pl.pallas_call(
        kernel,
        out_shape=jax.ShapeDtypeStruct((N, Ho1_pad, Wo1, o_pad), compute_dtype),
        grid=(N, n_hblk),
        in_specs=[
            # Whole flattened image; index_map constant along the band axis, so it
            # stays resident across the inner grid dimension (no re-DMA).
            pl.BlockSpec((1, M_in, c_pad), lambda n, h: (n, 0, 0)),
            # Grid-invariant folded weights (fetched once).
            pl.BlockSpec((k_pad, o_pad), lambda n, h: (0, 0)),
        ],
        out_specs=pl.BlockSpec((1, th, Wo1, o_pad), lambda n, h: (n, h, 0, 0)),
        compiler_params=pltpu.CompilerParams(
            dimension_semantics=("parallel", "parallel"),
            vmem_limit_bytes=vmem_limit,
        ),
        cost_estimate=cost,
    )(xf, wt)

    # Valid channels, stride subsampling, back to NCHW (one fused XLA pass).
    # TODO(synk): for stride > 1 the kernel still computes the dense stride-1 grid
    #             (~stride^2 extra MXU work); fold the stride into the band/tap
    #             indexing if strided layers become hot.
    out = out[:, :Ho1, :, :O]
    out = out[:, 0:(Ho - 1) * stride + 1:stride,
              0:(Wo - 1) * stride + 1:stride, :]
    return jnp.transpose(out, (0, 3, 1, 2)).astype(x.dtype)


# --------------------------------- main --------------------------------------

if __name__ == "__main__":
    N, C, H, W = 2, 4, 16, 16         # in_channels = 4
    O, KH, KW = 8, 3, 3               # out_channels = 8, kernel_size = 3, padding = 1
    eps = 1e-3                        # matches nn.BatchNorm2d(in_channels, eps=0.001)

    key = jax.random.PRNGKey(0)
    k_x, k_w, k_g, k_b, k_m, k_v = jax.random.split(key, 6)
    x = jax.random.normal(k_x, (N, C, H, W), jnp.float32)
    params = {
        "weight": jax.random.normal(k_w, (O, C, KH, KW), jnp.float32) * 0.1,
        "gamma": jax.random.uniform(k_g, (C,), jnp.float32, 0.5, 1.5),
        "beta": jax.random.normal(k_b, (C,), jnp.float32) * 0.1,
        "running_mean": jax.random.normal(k_m, (C,), jnp.float32) * 0.1,
        "running_var": jax.random.uniform(k_v, (C,), jnp.float32, 0.5, 1.5),
    }

    # Pure-JAX reference (inference-mode BN + bias-free conv), f32.
    inv_std = 1.0 / jnp.sqrt(params["running_var"] + eps)
    x_bn_ref = (x - params["running_mean"][None, :, None, None]) * \
        (params["gamma"] * inv_std)[None, :, None, None] + \
        params["beta"][None, :, None, None]
    y_ref = jax.lax.conv_general_dilated(
        x_bn_ref, params["weight"], window_strides=(1, 1),
        padding=((1, 1), (1, 1)),
        dimension_numbers=("NCHW", "OIHW", "NCHW"),
    )

    # f32 compute path: tight numerics check.
    y_f32 = basic_quant_conv2d(x, params, stride=1, padding=1, eps=eps,
                               compute_dtype=jnp.float32)
    jax.block_until_ready(y_f32)
    assert y_f32.shape == (N, O, H, W), y_f32.shape
    assert jnp.allclose(y_f32, y_ref, atol=1e-3, rtol=1e-3), \
        float(jnp.max(jnp.abs(y_f32 - y_ref)))

    # bf16 MXU path (default): f32 accumulation, bf16-appropriate tolerance.
    y_bf16 = basic_quant_conv2d(x, params, stride=1, padding=1, eps=eps)
    jax.block_until_ready(y_bf16)
    assert y_bf16.shape == (N, O, H, W), y_bf16.shape
    assert jnp.allclose(y_bf16, y_ref, atol=5e-2, rtol=5e-2), \
        float(jnp.max(jnp.abs(y_bf16 - y_ref)))

    print("KERNEL_OK")
</pallas_src>

<mosaic_0001>
module attributes {stable_mosaic.version = 11 : i64} {
  func.func @kernel(%arg0: i32, %arg1: i32, %arg2: memref<1x592x8xf32, #tpu.memory_space<vmem>>, %arg3: memref<128x128xf32, #tpu.memory_space<vmem>>, %arg4: memref<1x8x16x128xf32, #tpu.memory_space<vmem>>) attributes {dimension_semantics = [#tpu.dimension_semantics<parallel>, #tpu.dimension_semantics<parallel>], iteration_bounds = array<i64: 2, 2>, scalar_prefetch = 0 : i64, scratch_operands = 0 : i64, tpu.core_type = #tpu.core_type<tc>, window_params = [{transform_indices = @transform_0, window_bounds = array<i64: 1, 592, 8>}, {pipeline_mode = #tpu.pipeline_mode<synchronous>, transform_indices = @transform_1, window_bounds = array<i64: 128, 128>}, {transform_indices = @transform_2, window_bounds = array<i64: 1, 8, 16, 128>}]} {
    %c256_i32 = arith.constant 256 : i32
    %0 = arith.muli %arg1, %c256_i32 : i32
    %1 = tpu.assume_multiple %0, 256 : i32
    %c0_i32 = arith.constant 0 : i32
    %2 = arith.addi %1, %c0_i32 : i32
    %3 = tpu.assume_multiple %2, 16 : i32
    %c0 = arith.constant 0 : index
    %4 = arith.index_cast %3 : i32 to index
    %c0_0 = arith.constant 0 : index
    %5 = vector.load %arg2[%c0, %4, %c0_0] : memref<1x592x8xf32, #tpu.memory_space<vmem>>, vector<1x256x8xf32>
    %6 = vector.shape_cast %5 : vector<1x256x8xf32> to vector<256x8xf32>
    %c1_i32 = arith.constant 1 : i32
    %7 = arith.addi %1, %c1_i32 : i32
    %c0_1 = arith.constant 0 : index
    %8 = arith.index_cast %7 : i32 to index
    %c0_2 = arith.constant 0 : index
    %9 = vector.load %arg2[%c0_1, %8, %c0_2] : memref<1x592x8xf32, #tpu.memory_space<vmem>>, vector<1x256x8xf32>
    %10 = vector.shape_cast %9 : vector<1x256x8xf32> to vector<256x8xf32>
    %c2_i32 = arith.constant 2 : i32
    %11 = arith.addi %1, %c2_i32 : i32
    %c0_3 = arith.constant 0 : index
    %12 = arith.index_cast %11 : i32 to index
    %c0_4 = arith.constant 0 : index
    %13 = vector.load %arg2[%c0_3, %12, %c0_4] : memref<1x592x8xf32, #tpu.memory_space<vmem>>, vector<1x256x8xf32>
    %14 = vector.shape_cast %13 : vector<1x256x8xf32> to vector<256x8xf32>
    %c32_i32 = arith.constant 32 : i32
    %15 = arith.addi %1, %c32_i32 : i32
    %16 = tpu.assume_multiple %15, 16 : i32
    %c0_5 = arith.constant 0 : index
    %17 = arith.index_cast %16 : i32 to index
    %c0_6 = arith.constant 0 : index
    %18 = vector.load %arg2[%c0_5, %17, %c0_6] : memref<1x592x8xf32, #tpu.memory_space<vmem>>, vector<1x256x8xf32>
    %19 = vector.shape_cast %18 : vector<1x256x8xf32> to vector<256x8xf32>
    %c33_i32 = arith.constant 33 : i32
    %20 = arith.addi %1, %c33_i32 : i32
    %c0_7 = arith.constant 0 : index
    %21 = arith.index_cast %20 : i32 to index
    %c0_8 = arith.constant 0 : index
    %22 = vector.load %arg2[%c0_7, %21, %c0_8] : memref<1x592x8xf32, #tpu.memory_space<vmem>>, vector<1x256x8xf32>
    %23 = vector.shape_cast %22 : vector<1x256x8xf32> to vector<256x8xf32>
    %c34_i32 = arith.constant 34 : i32
    %24 = arith.addi %1, %c34_i32 : i32
    %c0_9 = arith.constant 0 : index
    %25 = arith.index_cast %24 : i32 to index
    %c0_10 = arith.constant 0 : index
    %26 = vector.load %arg2[%c0_9, %25, %c0_10] : memref<1x592x8xf32, #tpu.memory_space<vmem>>, vector<1x256x8xf32>
    %27 = vector.shape_cast %26 : vector<1x256x8xf32> to vector<256x8xf32>
    %c64_i32 = arith.constant 64 : i32
    %28 = arith.addi %1, %c64_i32 : i32
    %29 = tpu.assume_multiple %28, 16 : i32
    %c0_11 = arith.constant 0 : index
    %30 = arith.index_cast %29 : i32 to index
    %c0_12 = arith.constant 0 : index
    %31 = vector.load %arg2[%c0_11, %30, %c0_12] : memref<1x592x8xf32, #tpu.memory_space<vmem>>, vector<1x256x8xf32>
    %32 = vector.shape_cast %31 : vector<1x256x8xf32> to vector<256x8xf32>
    %c65_i32 = arith.constant 65 : i32
    %33 = arith.addi %1, %c65_i32 : i32
    %c0_13 = arith.constant 0 : index
    %34 = arith.index_cast %33 : i32 to index
    %c0_14 = arith.constant 0 : index
    %35 = vector.load %arg2[%c0_13, %34, %c0_14] : memref<1x592x8xf32, #tpu.memory_space<vmem>>, vector<1x256x8xf32>
    %36 = vector.shape_cast %35 : vector<1x256x8xf32> to vector<256x8xf32>
    %c66_i32 = arith.constant 66 : i32
    %37 = arith.addi %1, %c66_i32 : i32
    %c0_15 = arith.constant 0 : index
    %38 = arith.index_cast %37 : i32 to index
    %c0_16 = arith.constant 0 : index
    %39 = vector.load %arg2[%c0_15, %38, %c0_16] : memref<1x592x8xf32, #tpu.memory_space<vmem>>, vector<1x256x8xf32>
    %40 = vector.shape_cast %39 : vector<1x256x8xf32> to vector<256x8xf32>
    %cst = arith.constant 0.000000e+00 : f32
    %41 = vector.broadcast %cst : f32 to vector<256x56xf32>
    %42 = tpu.concatenate %6, %10, %14, %19, %23, %27, %32, %36, %40, %41 in 1 : vector<256x8xf32>, vector<256x8xf32>, vector<256x8xf32>, vector<256x8xf32>, vector<256x8xf32>, vector<256x8xf32>, vector<256x8xf32>, vector<256x8xf32>, vector<256x8xf32>, vector<256x56xf32> -> vector<256x128xf32>
    %c0_17 = arith.constant 0 : index
    %c0_18 = arith.constant 0 : index
    %43 = vector.load %arg3[%c0_17, %c0_18] : memref<128x128xf32, #tpu.memory_space<vmem>>, vector<128x128xf32>
    %cst_19 = arith.constant dense<0.000000e+00> : vector<256x128xf32>
    %44 = tpu.matmul %42, %43, %cst_19 {dimension_numbers = #tpu.dot_dimension_numbers<[1], [0], [0], [1], [0, 0, 1, 1], [], []>} : vector<256x128xf32>, vector<128x128xf32>, vector<256x128xf32> -> vector<256x128xf32>
    %45 = vector.shape_cast %44 : vector<256x128xf32> to vector<8x32x128xf32>
    %46 = vector.extract_strided_slice %45 {offsets = [0, 0, 0], sizes = [8, 16, 128], strides = [1, 1, 1]} : vector<8x32x128xf32> to vector<8x16x128xf32>
    %c0_20 = arith.constant 0 : index
    %c0_21 = arith.constant 0 : index
    %c0_22 = arith.constant 0 : index
    %c0_23 = arith.constant 0 : index
    %47 = vector.load %arg4[%c0_20, %c0_21, %c0_22, %c0_23] : memref<1x8x16x128xf32, #tpu.memory_space<vmem>>, vector<1x8x16x128xf32>
    %48 = vector.shape_cast %47 : vector<1x8x16x128xf32> to vector<8x16x128xf32>
    %49 = vector.shape_cast %46 : vector<8x16x128xf32> to vector<1x8x16x128xf32>
    tpu.vector_store %arg4[%c0_20, %c0_21, %c0_22, %c0_23], %49 {strides = array<i32>} : memref<1x8x16x128xf32, #tpu.memory_space<vmem>>, vector<1x8x16x128xf32>,
    return
  }
  func.func @transform_0(%arg0: i32, %arg1: i32) -> (i32, i32, i32) {
    %c0_i32 = arith.constant 0 : i32
    %c0_i32_0 = arith.constant 0 : i32
    %c0_i32_1 = arith.constant 0 : i32
    return %arg0, %c0_i32, %c0_i32_0 : i32, i32, i32
  }
  func.func @transform_1(%arg0: i32, %arg1: i32) -> (i32, i32) {
    %c0_i32 = arith.constant 0 : i32
    %c0_i32_0 = arith.constant 0 : i32
    %c0_i32_1 = arith.constant 0 : i32
    return %c0_i32, %c0_i32_0 : i32, i32
  }
  func.func @transform_2(%arg0: i32, %arg1: i32) -> (i32, i32, i32, i32) {
    %c0_i32 = arith.constant 0 : i32
    %c0_i32_0 = arith.constant 0 : i32
    %c0_i32_1 = arith.constant 0 : i32
    return %arg0, %arg1, %c0_i32, %c0_i32_0 : i32, i32, i32, i32
  }
}

</mosaic_0001>

<bundles_post_ra>
// kernel: basic_quant_conv2d.1
= control target key start
LH: loop header
LB: loop body
LE: loop exit
PB: predicated region body
PF: predicated region fallthrough
CT: control target
= control target key end

     0   :  { %s2750_s9 = smov 0   ;;  %s2752_s10 = smov 0   ;;  %s4340_s0 = inlined_call_operand.vmem [shape: f32[2,592,8], index: 0, kind: input, shape index: {}]   ;;  %s4341_s1 = inlined_call_operand.vmem [shape: f32[128,128], index: 1, kind: input, shape index: {}]   ;;  %s4342_s2 = inlined_call_operand.vmem [shape: f32[2,16,16,128], index: 2, kind: output, shape index: {}]  }
   0x1   :  { %s2754_s11 = smov 0   ;;  %s2756_s12 = smov 0  }
   0x2   :  { %s2758_s13 = smov 0  }
   0x3 LB: > { %s21_s14 = sadd.s32 1, %s2717_s11  ;;  %s24_s15 = sadd.s32 1, %s2721_s12  ;;  %s2725_s13 = sphi %s2758_s13, %s12_s13   ;;  %s2721_s12 = sphi %s2756_s12, %s4492_s12   ;;  %s2717_s11 = sphi %s2754_s11, %s4491_s11   ;;  %s2713_s10 = sphi %s2752_s10, %s4490_s10   ;;  %s2709_s9 = sphi %s2750_s9, %s4489_s9  }
   0x4   : > { %p22_p0 = scmp.ge.s32.totalorder %s21_s14, 2  ;;  %p2157_p1 = scmp.ge.s32.totalorder %s2725_s13, 1 }
   0x5   : > { %p126_p2 = scmp.lt.s32.totalorder %s2725_s13, 5 }
   0x6   : > { %s4494_s14 = smov (%p22_p0, %s21_s14), 0  ;;  %s4496_s15 = smov (!%p22_p0, %s24_s15), %s2721_s12 }
   0x7   : > { %p127_p3 = pnand %p2157_p1, %p126_p2  ;;  %p26_p4 = scmp.ge.s32.totalorder %s4496_s15, 2 }
   0x9   : > { %s4498_s15 = smov (%p26_p4, %s4496_s15), 0  ;;  %130 = sbr.rel (%p127_p3) target bundleno = 861 (0x35d), region = 28 }
  0x10   : > { %p153_p5 = scmp.lt.s32.totalorder %s2713_s10, 1  ;;  %s2163_s17 = sshll.u32 %s2709_s9, 8  ;;  %vm1499_vm0 = vcmask 64512   ;;  %vm1532_vm1 = vcmask 130048   ;;  %vm1565_vm2 = vcmask 195584   ;;  %vm1598_vm3 = vcmask 261120  }
  0x11   : > { %s2727_s22 = smov 8   ;;  %s2728_s23 = smov 16   ;;  %vm1631_vm4 = vcmask 326656   ;;  %vm1664_vm5 = vcmask 392192   ;;  %vm1697_vm6 = vcmask 457728   ;;  %vm1730_vm7 = vcmask 523264  }
  0x12   : > { %s4500_s10 = smov (!%p153_p5, %s2713_s10), 1  ;;  %s2729_s24 = smov 24   ;;  %vm1763_vm8 = vcmask 588800  }
  0x13   : > { %s2638_s16 = smul.u32 592, %s4500_s10  ;;  %s2730_s25 = smov 32  }
  0x14   : > { %s2732_s28 = smov 48  }
  0x15   : > { %s157_s20 = scalar_lea.vmem %s4340_s0, %s2638_s16  ;;  %s2733_s16 = smov 56  }
  0x16   : > { %s2789_s21 = scalar_lea.vmem %s157_s20, %s2163_s17  ;;  %s2731_s17 = smov 40  }
  0x17   : > { %v2167_v0 = vld [vmem:[%s2789_s21 + $0x11] sm:$0xff]  ;;  %v2165_v1 = vld [vmem:[%s2789_s21 + $0x1] sm:$0xff]  ;;  %v2168_v2 = vld [vmem:[%s2789_s21 + $0x19] sm:$0xff] }
  0x18   : > { %511 = vrot.lane.b32.xlu1 %v2167_v0, %s2727_s22  ;;  %507 = vrot.lane.b32.xlu0 %v2165_v1, %s2727_s22  ;;  %v2166_v3 = vld [vmem:[%s2789_s21 + $0x9] sm:$0xff]  ;;  %v2803_v5 = vld [vmem:[%s2789_s21 + $0x21] sm:$0xff] }
  0x19   : > { %v2800_v4 = vld [vmem:[%s2789_s21 + $0x29] sm:$0xff]  ;;  %v2810_v6 = vld [vmem:[%s2789_s21 + $0x39] sm:$0xff]  ;;  %v2813_v7 = vld [vmem:[%s2789_s21 + $0x31] sm:$0xff] }
  0x1a   : > { %v2820_v8 = vld [vmem:[%s2789_s21 + $0x49] sm:$0xff]  ;;  %v2823_v9 = vld [vmem:[%s2789_s21 + $0x41] sm:$0xff]  ;;  %v2830_v10 = vld [vmem:[%s2789_s21 + $0x59] sm:$0xff] }
  0x1b   : > { %v2833_v11 = vld [vmem:[%s2789_s21 + $0x51] sm:$0xff]  ;;  %v2178_v12 = vld [vmem:[%s2789_s21 + $0x69] sm:$0xff]  ;;  %v2841_v13 = vld [vmem:[%s2789_s21 + $0x61] sm:$0xff] }
  0x1c   : > { %513 = vrot.lane.b32.xlu1 %v2168_v2, %s2727_s22  ;;  %509 = vrot.lane.b32.xlu0 %v2166_v3, %s2727_s22  ;;  %4383 = vst [vmem:[#allocation2_spill] sm:$0xff] %v2841_v13  ;;  %v2180_v14 = vld [vmem:[%s2789_s21 + $0x79] sm:$0xff]  ;;  %v2179_v15 = vld [vmem:[%s2789_s21 + $0x71] sm:$0xff] }
  0x1d   : > { %v2182_v16 = vld [vmem:[%s2789_s21 + $0x89] sm:$0xff]  ;;  %v2181_v17 = vld [vmem:[%s2789_s21 + $0x81] sm:$0xff]  ;;  %v2184_v18 = vld [vmem:[%s2789_s21 + $0x99] sm:$0xff] }
  0x1e   : > { %v2183_v19 = vld [vmem:[%s2789_s21 + $0x91] sm:$0xff]  ;;  %v2859_v20 = vld [vmem:[%s2789_s21 + $0xa9] sm:$0xff]  ;;  %v2862_v21 = vld [vmem:[%s2789_s21 + $0xa1] sm:$0xff] }
  0x1f   : > { %v2869_v22 = vld [vmem:[%s2789_s21 + $0xb9] sm:$0xff]  ;;  %v2872_v23 = vld [vmem:[%s2789_s21 + $0xb1] sm:$0xff]  ;;  %v2879_v24 = vld [vmem:[%s2789_s21 + $0xc9] sm:$0xff] }
  0x20   : > { %517 = vrot.lane.b32.xlu1 %v2800_v4, %s2727_s22  ;;  %515 = vrot.lane.b32.xlu0 %v2803_v5, %s2727_s22  ;;  %4384 = vst [vmem:[#allocation3_spill] sm:$0xff] %v2869_v22  ;;  %v2882_v25 = vld [vmem:[%s2789_s21 + $0xc1] sm:$0xff]  ;;  %v2889_v26 = vld [vmem:[%s2789_s21 + $0xd9] sm:$0xff] }
  0x21   : > { %4385 = vst [vmem:[#allocation4_spill] sm:$0xff] %v2889_v26  ;;  %v2892_v27 = vld [vmem:[%s2789_s21 + $0xd1] sm:$0xff]  ;;  %v2899_v28 = vld [vmem:[%s2789_s21 + $0xe9] sm:$0xff]  ;;  %v2902_v29 = vld [vmem:[%s2789_s21 + $0xe1] sm:$0xff] }
  0x22   : > { %4386 = vst [vmem:[#allocation5_spill] sm:$0xff] %v2892_v27  ;;  %4387 = vst [vmem:[#allocation6_spill] sm:$0xff] %v2899_v28  ;;  %v2196_v30 = vld [vmem:[%s2789_s21 + $0xf9] sm:$0xff]  ;;  %v2195_v31 = vld [vmem:[%s2789_s21 + $0xf1] sm:$0xff] }
  0x23   : > { %4388 = vst [vmem:[#allocation7_spill] sm:$0xff] %v2902_v29  ;;  %v2199_v32 = vld [vmem:[%s2789_s21 + $0xa] sm:$0xff]  ;;  %v2198_v33 = vld [vmem:[%s2789_s21 + $0x2] sm:$0xff]  ;;  %v2201_v34 = vld [vmem:[%s2789_s21 + $0x1a] sm:$0xff] }
  0x24   : > { %521 = vrot.lane.b32.xlu1 %v2810_v6, %s2727_s22  ;;  %519 = vrot.lane.b32.xlu0 %v2813_v7, %s2727_s22  ;;  %v2200_v35 = vld [vmem:[%s2789_s21 + $0x12] sm:$0xff]  ;;  %v2921_v36 = vld [vmem:[%s2789_s21 + $0x2a] sm:$0xff] }
  0x25   : > { %v2924_v37 = vld [vmem:[%s2789_s21 + $0x22] sm:$0xff]  ;;  %v2931_v38 = vld [vmem:[%s2789_s21 + $0x3a] sm:$0xff]  ;;  %v2934_v39 = vld [vmem:[%s2789_s21 + $0x32] sm:$0xff] }
  0x26   : > { %4389 = vst [vmem:[#allocation8_spill] sm:$0xff] %v2931_v38  ;;  %4390 = vst [vmem:[#allocation9_spill] sm:$0xff] %v2934_v39  ;;  %v2941_v40 = vld [vmem:[%s2789_s21 + $0x4a] sm:$0xff]  ;;  %v2944_v41 = vld [vmem:[%s2789_s21 + $0x42] sm:$0xff] }
  0x27   : > { %4391 = vst [vmem:[#allocation10_spill] sm:$0xff] %v2941_v40  ;;  %v2951_v42 = vld [vmem:[%s2789_s21 + $0x5a] sm:$0xff]  ;;  %v2954_v43 = vld [vmem:[%s2789_s21 + $0x52] sm:$0xff]  ;;  %v2961_v44 = vld [vmem:[%s2789_s21 + $0x6a] sm:$0xff] }
  0x28   : > { %525 = vrot.lane.b32.xlu1 %v2820_v8, %s2727_s22  ;;  %523 = vrot.lane.b32.xlu0 %v2823_v9, %s2727_s22  ;;  %4392 = vst [vmem:[#allocation11_spill] sm:$0xff] %v2951_v42  ;;  %4393 = vst [vmem:[#allocation12_spill] sm:$0xff] %v2954_v43  ;;  %v2964_v45 = vld [vmem:[%s2789_s21 + $0x62] sm:$0xff]  ;;  %v2213_v46 = vld [vmem:[%s2789_s21 + $0x7a] sm:$0xff] }
  0x29   : > { %4394 = vst [vmem:[#allocation13_spill] sm:$0xff] %v2961_v44  ;;  %4395 = vst [vmem:[#allocation14_spill] sm:$0xff] %v2964_v45  ;;  %v2212_v47 = vld [vmem:[%s2789_s21 + $0x72] sm:$0xff]  ;;  %v2215_v48 = vld [vmem:[%s2789_s21 + $0x8a] sm:$0xff] }
  0x2a   : > { %v2214_v49 = vld [vmem:[%s2789_s21 + $0x82] sm:$0xff]  ;;  %v2217_v50 = vld [vmem:[%s2789_s21 + $0x9a] sm:$0xff]  ;;  %v2216_v51 = vld [vmem:[%s2789_s21 + $0x92] sm:$0xff] }
  0x2b   : > { %v2983_v52 = vld [vmem:[%s2789_s21 + $0xaa] sm:$0xff]  ;;  %v2986_v53 = vld [vmem:[%s2789_s21 + $0xa2] sm:$0xff]  ;;  %v2993_v54 = vld [vmem:[%s2789_s21 + $0xba] sm:$0xff] }
  0x2c   : > { %529 = vrot.lane.b32.xlu1 %v2830_v10, %s2727_s22  ;;  %527 = vrot.lane.b32.xlu0 %v2833_v11, %s2727_s22  ;;  %4396 = vst [vmem:[#allocation15_spill] sm:$0xff] %v2993_v54  ;;  %v2996_v55 = vld [vmem:[%s2789_s21 + $0xb2] sm:$0xff]  ;;  %v3003_v56 = vld [vmem:[%s2789_s21 + $0xca] sm:$0xff] }
  0x2d   : > { %4397 = vst [vmem:[#allocation16_spill] sm:$0xff] %v2996_v55  ;;  %4398 = vst [vmem:[#allocation17_spill] sm:$0xff] %v3003_v56  ;;  %v3006_v57 = vld [vmem:[%s2789_s21 + $0xc2] sm:$0xff]  ;;  %v3013_v58 = vld [vmem:[%s2789_s21 + $0xda] sm:$0xff] }
  0x2e   : > { %4399 = vst [vmem:[#allocation18_spill] sm:$0xff] %v3006_v57  ;;  %4400 = vst [vmem:[#allocation19_spill] sm:$0xff] %v3013_v58  ;;  %v3016_v59 = vld [vmem:[%s2789_s21 + $0xd2] sm:$0xff]  ;;  %v3027_v62 = vld [vmem:[%s2789_s21 + $0xea] sm:$0xff] }
  0x2f   : > { %4401 = vst [vmem:[#allocation20_spill] sm:$0xff] %v3016_v59  ;;  %4404 = vst [vmem:[#allocation23_spill] sm:$0xff] %v3027_v62  ;;  %v3030_v63 = vld [vmem:[%s2789_s21 + $0xe2] sm:$0xff] }
  0x30   : > { %533 = vrot.lane.b32.xlu1 %v2178_v12, %s2727_s22  ;;  %531 = vrot.lane.b32.xlu0 %v2841_v13, %s2727_s22  ;;  %4405 = vst [vmem:[#allocation24_spill] sm:$0xff] %v3030_v63  ;;  %v176_v2 = vld [vmem:[%s2789_s21 + $0x28] sm:$0xff]  ;;  %v175_v3 = vld [vmem:[%s2789_s21 + $0x20] sm:$0xff] }
  0x31   : > { %v2229_v12 = vld [vmem:[%s2789_s21 + $0xfa] sm:$0xff] }
  0x34   : > { %537 = vrot.lane.b32.xlu1 %v2180_v14, %s2727_s22  ;;  %535 = vrot.lane.b32.xlu0 %v2179_v15, %s2727_s22  ;;  %v2228_v14 = vld [vmem:[%s2789_s21 + $0xf2] sm:$0xff] }
  0x38   : > { %541 = vrot.lane.b32.xlu1 %v2182_v16, %s2727_s22  ;;  %539 = vrot.lane.b32.xlu0 %v2181_v17, %s2727_s22 }
  0x3c   : > { %545 = vrot.lane.b32.xlu1 %v2184_v18, %s2727_s22  ;;  %543 = vrot.lane.b32.xlu0 %v2183_v19, %s2727_s22  ;;  %v178_v19 = vld [vmem:[%s2789_s21 + $0x38] sm:$0xff] }
  0x40   : > { %549 = vrot.lane.b32.xlu1 %v2859_v20, %s2727_s22  ;;  %547 = vrot.lane.b32.xlu0 %v2862_v21, %s2727_s22 }
  0x44   : > { %553 = vrot.lane.b32.xlu1 %v2869_v22, %s2727_s22  ;;  %551 = vrot.lane.b32.xlu0 %v2872_v23, %s2727_s22 }
  0x48   : > { %557 = vrot.lane.b32.xlu1 %v2879_v24, %s2727_s22  ;;  %555 = vrot.lane.b32.xlu0 %v2882_v25, %s2727_s22 }
  0x4c   : > { %561 = vrot.lane.b32.xlu1 %v2889_v26, %s2727_s22  ;;  %559 = vrot.lane.b32.xlu0 %v2892_v27, %s2727_s22  ;;  %v3212_v27 = vld [vmem:[%s2789_s21 + $0xe0] sm:$0xff] }
  0x50   : > { %565 = vrot.lane.b32.xlu1 %v2899_v28, %s2727_s22  ;;  %563 = vrot.lane.b32.xlu0 %v2902_v29, %s2727_s22 }
  0x54   : > { %569 = vrot.lane.b32.xlu1 %v2196_v30, %s2727_s22  ;;  %567 = vrot.lane.b32.xlu0 %v2195_v31, %s2727_s22  ;;  %v177_v30 = vld [vmem:[%s2789_s21 + $0x30] sm:$0xff] }
  0x58   : > { %637 = vrot.lane.b32.xlu1 %v2199_v32, %s2728_s23  ;;  %635 = vrot.lane.b32.xlu0 %v2198_v33, %s2728_s23 }
  0x5c   : > { %641 = vrot.lane.b32.xlu1 %v2201_v34, %s2728_s23  ;;  %639 = vrot.lane.b32.xlu0 %v2200_v35, %s2728_s23 }
  0x60   : > { %645 = vrot.lane.b32.xlu1 %v2921_v36, %s2728_s23  ;;  %643 = vrot.lane.b32.xlu0 %v2924_v37, %s2728_s23 }
  0x64   : > { %649 = vrot.lane.b32.xlu1 %v2931_v38, %s2728_s23  ;;  %647 = vrot.lane.b32.xlu0 %v2934_v39, %s2728_s23  ;;  %v3233_v39 = vld [vmem:[%s2789_s21 + $0x108] sm:$0xff] }
  0x65   : > { %4422 = vst [vmem:[#allocation41_spill] sm:$0xff] %v3233_v39 }
  0x68   : > { %653 = vrot.lane.b32.xlu1 %v2941_v40, %s2728_s23  ;;  %651 = vrot.lane.b32.xlu0 %v2944_v41, %s2728_s23  ;;  %v3223_v40 = vld [vmem:[%s2789_s21 + $0xf8] sm:$0xff] }
  0x69   : > { %4420 = vst [vmem:[#allocation39_spill] sm:$0xff] %v3223_v40 }
  0x6c   : > { %657 = vrot.lane.b32.xlu1 %v2951_v42, %s2728_s23  ;;  %655 = vrot.lane.b32.xlu0 %v2954_v43, %s2728_s23  ;;  %v3209_v43 = vld [vmem:[%s2789_s21 + $0xe8] sm:$0xff] }
  0x70   : > { %661 = vrot.lane.b32.xlu1 %v2961_v44, %s2728_s23  ;;  %659 = vrot.lane.b32.xlu0 %v2964_v45, %s2728_s23  ;;  %v191_v44 = vld [vmem:[%s2789_s21 + $0xa0] sm:$0xff] }
  0x74   : > { %665 = vrot.lane.b32.xlu1 %v2213_v46, %s2728_s23  ;;  %663 = vrot.lane.b32.xlu0 %v2212_v47, %s2728_s23 }
  0x78   : > { %669 = vrot.lane.b32.xlu1 %v2215_v48, %s2728_s23  ;;  %667 = vrot.lane.b32.xlu0 %v2214_v49, %s2728_s23  ;;  %v3073_v49 = vld [vmem:[%s2789_s21 + $0x48] sm:$0xff] }
  0x7c   : > { %673 = vrot.lane.b32.xlu1 %v2217_v50, %s2728_s23  ;;  %671 = vrot.lane.b32.xlu0 %v2216_v51, %s2728_s23  ;;  %v3076_v50 = vld [vmem:[%s2789_s21 + $0x40] sm:$0xff] }
  0x80   : > { %677 = vrot.lane.b32.xlu1 %v2983_v52, %s2728_s23  ;;  %675 = vrot.lane.b32.xlu0 %v2986_v53, %s2728_s23 }
  0x84   : > { %681 = vrot.lane.b32.xlu1 %v2993_v54, %s2728_s23  ;;  %679 = vrot.lane.b32.xlu0 %v2996_v55, %s2728_s23  ;;  %v3236_v55 = vld [vmem:[%s2789_s21 + $0x100] sm:$0xff] }
  0x85   : > { %4423 = vst [vmem:[#allocation42_spill] sm:$0xff] %v3236_v55 }
  0x88   : > { %685 = vrot.lane.b32.xlu1 %v3003_v56, %s2728_s23  ;;  %683 = vrot.lane.b32.xlu0 %v3006_v57, %s2728_s23  ;;  %v3226_v56 = vld [vmem:[%s2789_s21 + $0xf0] sm:$0xff] }
  0x89   : > { %4421 = vst [vmem:[#allocation40_spill] sm:$0xff] %v3226_v56 }
  0x8a   : > { %v3018_v60 = vpop.permute.xlu1 %511  ;;  %v3020_v61 = vpop.permute.xlu0 %507 }
  0x8b   : > { %4402 = vst [vmem:[#allocation21_spill] sm:$0xff] %v3018_v60  ;;  %4403 = vst [vmem:[#allocation22_spill] sm:$0xff] %v3020_v61  ;;  %v192_v61 = vld [vmem:[%s2789_s21 + $0xa8] sm:$0xff] }
  0x8c   : > { %689 = vrot.lane.b32.xlu1 %v3013_v58, %s2728_s23  ;;  %687 = vrot.lane.b32.xlu0 %v3016_v59, %s2728_s23 }
  0x8e   : > { %v3032_v0 = vpop.permute.xlu1 %513  ;;  %v3034_v1 = vpop.permute.xlu0 %509 }
  0x8f   : > { %4406 = vst [vmem:[#allocation25_spill] sm:$0xff] %v3032_v0  ;;  %4407 = vst [vmem:[#allocation26_spill] sm:$0xff] %v3034_v1  ;;  %v3118_v0 = vld [vmem:[%s2789_s21 + $0x70] sm:$0xff] }
  0x90   : > { %693 = vrot.lane.b32.xlu1 %v3027_v62, %s2728_s23  ;;  %691 = vrot.lane.b32.xlu0 %v3030_v63, %s2728_s23 }
  0x92   : > { %v518_v15 = vpop.permute.xlu1 %517  ;;  %v516_v16 = vpop.permute.xlu0 %515 }
  0x93   : > { %v3045_v17 = vsel %vm1499_vm0, %v176_v2, %v518_v15  ;;  %v3048_v18 = vsel %vm1499_vm0, %v175_v3, %v516_v16  ;;  %v3101_v16 = vld [vmem:[%s2789_s21 + $0x68] sm:$0xff] }
  0x94   : > { %697 = vrot.lane.b32.xlu1 %v2229_v12, %s2728_s23  ;;  %695 = vrot.lane.b32.xlu0 %v2228_v14, %s2728_s23  ;;  %v3090_v12 = vld [vmem:[%s2789_s21 + $0x50] sm:$0xff]  ;;  %s2734_s23 = smov 64  }
  0x96   : > { %v522_v31 = vpop.permute.xlu1 %521  ;;  %v520_v32 = vpop.permute.xlu0 %519 }
  0x97   : > { %v3055_v33 = vsel %vm1499_vm0, %v178_v19, %v522_v31  ;;  %v3058_v34 = vsel %vm1499_vm0, %v177_v30, %v520_v32  ;;  %v3115_v32 = vld [vmem:[%s2789_s21 + $0x78] sm:$0xff] }
  0x98   : > { %765 = vrot.lane.b32.xlu1 %v176_v2, %s2729_s24  ;;  %763 = vrot.lane.b32.xlu0 %v175_v3, %s2729_s24  ;;  %v3087_v3 = vld [vmem:[%s2789_s21 + $0x58] sm:$0xff] }
  0x9a   : > { %v3062_v35 = vpop.permute.xlu1 %525  ;;  %v3064_v46 = vpop.permute.xlu0 %523 }
  0x9c   : > { %769 = vrot.lane.b32.xlu1 %v178_v19, %s2729_s24  ;;  %767 = vrot.lane.b32.xlu0 %v177_v30, %s2729_s24  ;;  %v3104_v19 = vld [vmem:[%s2789_s21 + $0x60] sm:$0xff] }
  0x9e   : > { %v3068_v47 = vpop.permute.xlu1 %529  ;;  %v3070_v48 = vpop.permute.xlu0 %527 }
  0xa0   : > { %773 = vrot.lane.b32.xlu1 %v3073_v49, %s2729_s24  ;;  %771 = vrot.lane.b32.xlu0 %v3076_v50, %s2729_s24 }
  0xa2   : > { %v3082_v51 = vpop.permute.xlu1 %533  ;;  %v3084_v2 = vpop.permute.xlu0 %531 }
  0xa4   : > { %777 = vrot.lane.b32.xlu1 %v3087_v3, %s2729_s24  ;;  %775 = vrot.lane.b32.xlu0 %v3090_v12, %s2729_s24 }
  0xa6   : > { %v3096_v14 = vpop.permute.xlu1 %537  ;;  %v3098_v15 = vpop.permute.xlu0 %535 }
  0xa8   : > { %781 = vrot.lane.b32.xlu1 %v3101_v16, %s2729_s24  ;;  %779 = vrot.lane.b32.xlu0 %v3104_v19, %s2729_s24 }
  0xaa   : > { %v3110_v30 = vpop.permute.xlu1 %541  ;;  %v3112_v31 = vpop.permute.xlu0 %539 }
  0xab   : > { %4408 = vst [vmem:[#allocation27_spill] sm:$0xff] %v3110_v30  ;;  %4409 = vst [vmem:[#allocation28_spill] sm:$0xff] %v3112_v31  ;;  %v3129_v30 = vld [vmem:[%s2789_s21 + $0x88] sm:$0xff]  ;;  %v3132_v31 = vld [vmem:[%s2789_s21 + $0x80] sm:$0xff] }
  0xac   : > { %785 = vrot.lane.b32.xlu1 %v3115_v32, %s2729_s24  ;;  %783 = vrot.lane.b32.xlu0 %v3118_v0, %s2729_s24  ;;  %4412 = vst [vmem:[#allocation31_spill] sm:$0xff] %v3129_v30  ;;  %4413 = vst [vmem:[#allocation32_spill] sm:$0xff] %v3132_v31 }
  0xae   : > { %v3124_v60 = vpop.permute.xlu1 %545  ;;  %v3126_v1 = vpop.permute.xlu0 %543 }
  0xaf   : > { %4410 = vst [vmem:[#allocation29_spill] sm:$0xff] %v3124_v60  ;;  %4411 = vst [vmem:[#allocation30_spill] sm:$0xff] %v3126_v1  ;;  %v3141_v60 = vld [vmem:[%s2789_s21 + $0x98] sm:$0xff]  ;;  %v3144_v1 = vld [vmem:[%s2789_s21 + $0x90] sm:$0xff] }
  0xb0   : > { %789 = vrot.lane.b32.xlu1 %v3129_v30, %s2729_s24  ;;  %787 = vrot.lane.b32.xlu0 %v3132_v31, %s2729_s24  ;;  %4414 = vst [vmem:[#allocation33_spill] sm:$0xff] %v3141_v60  ;;  %4415 = vst [vmem:[#allocation34_spill] sm:$0xff] %v3144_v1  ;;  %v194_v30 = vld [vmem:[%s2789_s21 + $0xb8] sm:$0xff]  ;;  %v193_v31 = vld [vmem:[%s2789_s21 + $0xb0] sm:$0xff] }
  0xb2   : > { %v550_v62 = vpop.permute.xlu1 %549  ;;  %v548_v63 = vpop.permute.xlu0 %547 }
  0xb3   : > { %v3147_v28 = vsel %vm1499_vm0, %v192_v61, %v550_v62  ;;  %v3150_v45 = vsel %vm1499_vm0, %v191_v44, %v548_v63  ;;  %v3167_v62 = vld [vmem:[%s2789_s21 + $0xc8] sm:$0xff]  ;;  %v3170_v63 = vld [vmem:[%s2789_s21 + $0xc0] sm:$0xff] }
  0xb4   : > { %793 = vrot.lane.b32.xlu1 %v3141_v60, %s2729_s24  ;;  %791 = vrot.lane.b32.xlu0 %v3144_v1, %s2729_s24 }
  0xb6   : > { %v554_v13 = vpop.permute.xlu1 %553  ;;  %v552_v29 = vpop.permute.xlu0 %551 }
  0xb7   : > { %v3159_v42 = vsel %vm1499_vm0, %v194_v30, %v554_v13  ;;  %v3162_v58 = vsel %vm1499_vm0, %v193_v31, %v552_v29 }
  0xb8   : > { %797 = vrot.lane.b32.xlu1 %v192_v61, %s2729_s24  ;;  %795 = vrot.lane.b32.xlu0 %v191_v44, %s2729_s24 }
  0xba   : > { %v558_v60 = vpop.permute.xlu1 %557  ;;  %v556_v1 = vpop.permute.xlu0 %555 }
  0xbb   : > { %v3174_v59 = vsel %vm1499_vm0, %v3167_v62, %v558_v60  ;;  %v3178_v13 = vsel %vm1499_vm0, %v3170_v63, %v556_v1  ;;  %v3195_v1 = vld [vmem:[%s2789_s21 + $0xd8] sm:$0xff] }
  0xbc   : > { %801 = vrot.lane.b32.xlu1 %v194_v30, %s2729_s24  ;;  %799 = vrot.lane.b32.xlu0 %v193_v31, %s2729_s24  ;;  %v3198_v30 = vld [vmem:[%s2789_s21 + $0xd0] sm:$0xff] }
  0xbe   : > { %v3182_v29 = vpop.permute.xlu1 %561  ;;  %v3184_v44 = vpop.permute.xlu0 %559 }
  0xc0   : > { %805 = vrot.lane.b32.xlu1 %v3167_v62, %s2729_s24  ;;  %803 = vrot.lane.b32.xlu0 %v3170_v63, %s2729_s24 }
  0xc2   : > { %v3190_v60 = vpop.permute.xlu1 %565  ;;  %v3192_v61 = vpop.permute.xlu0 %563 }
  0xc4   : > { %809 = vrot.lane.b32.xlu1 %v3195_v1, %s2729_s24  ;;  %807 = vrot.lane.b32.xlu0 %v3198_v30, %s2729_s24 }
  0xc6   : > { %v3204_v31 = vpop.permute.xlu1 %569  ;;  %v3206_v26 = vpop.permute.xlu0 %567 }
  0xc7   : > { %4416 = vst [vmem:[#allocation35_spill] sm:$0xff] %v3204_v31  ;;  %4417 = vst [vmem:[#allocation36_spill] sm:$0xff] %v3206_v26 }
  0xc8   : > { %813 = vrot.lane.b32.xlu1 %v3209_v43, %s2729_s24  ;;  %811 = vrot.lane.b32.xlu0 %v3212_v27, %s2729_s24 }
  0xca   : > { %v3218_v38 = vpop.permute.xlu1 %637  ;;  %v3220_v54 = vpop.permute.xlu0 %635 }
  0xcb   : > { %4418 = vst [vmem:[#allocation37_spill] sm:$0xff] %v3218_v38  ;;  %4419 = vst [vmem:[#allocation38_spill] sm:$0xff] %v3220_v54  ;;  %v2262_v38 = vld [vmem:[%s2789_s21 + $0x118] sm:$0xff]  ;;  %v2261_v54 = vld [vmem:[%s2789_s21 + $0x110] sm:$0xff] }
  0xcc   : > { %817 = vrot.lane.b32.xlu1 %v3223_v40, %s2729_s24  ;;  %815 = vrot.lane.b32.xlu0 %v3226_v56, %s2729_s24 }
  0xce   : > { %v3238_v57 = vpop.permute.xlu1 %641  ;;  %v3240_v22 = vpop.permute.xlu0 %639 }
  0xcf   : > { %4424 = vst [vmem:[#allocation43_spill] sm:$0xff] %v3238_v57  ;;  %4425 = vst [vmem:[#allocation44_spill] sm:$0xff] %v3240_v22 }
  0xd0   : > { %821 = vrot.lane.b32.xlu1 %v3233_v39, %s2729_s24  ;;  %819 = vrot.lane.b32.xlu0 %v3236_v55, %s2729_s24 }
  0xd2   : > { %v646_v26 = vpop.permute.xlu1 %645  ;;  %v644_v40 = vpop.permute.xlu0 %643 }
  0xd3   : > { %v3250_v56 = vsel %vm1532_vm1, %v3045_v17, %v646_v26  ;;  %v3254_v57 = vsel %vm1532_vm1, %v3048_v18, %v644_v40  ;;  %v1509_v26 = vsel %vm1499_vm0, %v3073_v49, %v3062_v35  ;;  %v1513_v35 = vsel %vm1499_vm0, %v3101_v16, %v3082_v51  ;;  %v1798_v51 = vld [vmem:[%s4341_s1 + $0x10] sm:$0xff] }
  0xd4   : > { %825 = vrot.lane.b32.xlu1 %v2262_v38, %s2729_s24  ;;  %823 = vrot.lane.b32.xlu0 %v2261_v54, %s2729_s24 }
  0xd6   : > { %v650_v22 = vpop.permute.xlu1 %649  ;;  %v648_v39 = vpop.permute.xlu0 %647 }
  0xd7   : > { %v3260_v55 = vsel %vm1532_vm1, %v3055_v33, %v650_v22  ;;  %v3264_v31 = vsel %vm1532_vm1, %v3058_v34, %v648_v39  ;;  %v1508_v22 = vsel %vm1499_vm0, %v3076_v50, %v3064_v46  ;;  %v1512_v46 = vsel %vm1499_vm0, %v3104_v19, %v3084_v2  ;;  %v1799_v2 = vld [vmem:[%s4341_s1 + $0x18] sm:$0xff] }
  0xd8   : > { %893 = vrot.lane.b32.xlu1 %v2800_v4, %s2730_s25  ;;  %891 = vrot.lane.b32.xlu0 %v2803_v5, %s2730_s25  ;;  %v1511_v4 = vsel %vm1499_vm0, %v3087_v3, %v3068_v47  ;;  %v1510_v5 = vsel %vm1499_vm0, %v3090_v12, %v3070_v48 }
  0xda   : > { %v654_v38 = vpop.permute.xlu1 %653  ;;  %v652_v40 = vpop.permute.xlu0 %651 }
  0xdb   : > { %v3277_v39 = vsel %vm1532_vm1, %v1509_v26, %v654_v38  ;;  %v3280_v54 = vsel %vm1532_vm1, %v1508_v22, %v652_v40  ;;  %v1515_v40 = vsel %vm1499_vm0, %v3115_v32, %v3096_v14  ;;  %v1800_v14 = vld [vmem:[%s4341_s1 + $0x20] sm:$0xff] }
  0xdc   : > { %897 = vrot.lane.b32.xlu1 %v2810_v6, %s2730_s25  ;;  %895 = vrot.lane.b32.xlu0 %v2813_v7, %s2730_s25  ;;  %v1796_v6 = vld [vmem:[%s4341_s1] sm:$0xff]  ;;  %v1797_v7 = vld [vmem:[%s4341_s1 + $0x8] sm:$0xff] }
  0xdd   : > { %v2590_v26 = vpack.c.bf16 %v1797_v7, %v1796_v6 }
  0xde   : > { %v658_v17 = vpop.permute.xlu1 %657  ;;  %v656_v18 = vpop.permute.xlu0 %655 }
  0xdf   : > { %v3293_v33 = vsel %vm1532_vm1, %v1511_v4, %v658_v17  ;;  %v3296_v34 = vsel %vm1532_vm1, %v1510_v5, %v656_v18  ;;  %2591 = vmatprep.subr.bf16.mxu0 %v2590_v26  ;;  %2622 = vmatprep.subr.bf16.mxu1 %v2590_v26  ;;  %v1514_v4 = vsel %vm1499_vm0, %v3118_v0, %v3098_v15  ;;  %v1801_v15 = vld [vmem:[%s4341_s1 + $0x28] sm:$0xff] }
  0xe0   : > { %901 = vrot.lane.b32.xlu1 %v2820_v8, %s2730_s25  ;;  %899 = vrot.lane.b32.xlu0 %v2823_v9, %s2730_s25  ;;  %v2594_v18 = vpack.c.bf16 %v1799_v2, %v1798_v51  ;;  %v1805_v51 = vld [vmem:[%s4341_s1 + $0x48] sm:$0xff] }
  0xe1   : > { %2593 = vmatpush3.bf16.msra.mxu0 %v2590_v26  ;;  %2630 = vmatpush3.bf16.msra.mxu1 %v2590_v26 }
  0xe2   : > { %v662_v47 = vpop.permute.xlu1 %661  ;;  %v660_v48 = vpop.permute.xlu0 %659  ;;  %2595 = vmatprep.subr.bf16.mxu0 %v2594_v18  ;;  %2623 = vmatprep.subr.bf16.mxu1 %v2594_v18 }
  0xe3   : > { %v3315_v22 = vsel %vm1532_vm1, %v1513_v35, %v662_v47  ;;  %v3318_v38 = vsel %vm1532_vm1, %v1512_v46, %v660_v48  ;;  %v1803_v47 = vld [vmem:[%s4341_s1 + $0x38] sm:$0xff] }
  0xe4   : > { %905 = vrot.lane.b32.xlu1 %v2830_v10, %s2730_s25  ;;  %903 = vrot.lane.b32.xlu0 %v2833_v11, %s2730_s25 }
  0xe5   : > { %2597 = vmatpush3.bf16.msra.mxu0 %v2594_v18  ;;  %2631 = vmatpush3.bf16.msra.mxu1 %v2594_v18 }
  0xe6   : > { %v666_v5 = vpop.permute.xlu1 %665  ;;  %v664_v17 = vpop.permute.xlu0 %663 }
  0xe7   : > { %v3337_v6 = vsel %vm1532_vm1, %v1515_v40, %v666_v5  ;;  %v3340_v7 = vsel %vm1532_vm1, %v1514_v4, %v664_v17  ;;  %v1806_v5 = vld [vmem:[%s4341_s1 + $0x50] sm:$0xff] }
  0xe8   : > { %925 = vrot.lane.b32.xlu1 %v2859_v20, %s2730_s25  ;;  %923 = vrot.lane.b32.xlu0 %v2862_v21, %s2730_s25  ;;  %v2598_v20 = vpack.c.bf16 %v1801_v15, %v1800_v14  ;;  %v1802_v21 = vld [vmem:[%s4341_s1 + $0x30] sm:$0xff] }
  0xea   : > { %v3352_v35 = vpop.permute.xlu1 %669  ;;  %v3354_v46 = vpop.permute.xlu0 %667  ;;  %2599 = vmatprep.subr.bf16.mxu0 %v2598_v20  ;;  %2624 = vmatprep.subr.bf16.mxu1 %v2598_v20 }
  0xeb   : > { %2601 = vmatpush3.bf16.msra.mxu0 %v2598_v20  ;;  %2632 = vmatpush3.bf16.msra.mxu1 %v2598_v20 }
  0xec   : > { %1051 = vrot.lane.b32.xlu1 %v2986_v53, %s2731_s17  ;;  %1019 = vrot.lane.b32.xlu0 %v2924_v37, %s2731_s17  ;;  %v2602_v53 = vpack.c.bf16 %v1803_v47, %v1802_v21  ;;  %v1804_v37 = vld [vmem:[%s4341_s1 + $0x40] sm:$0xff]  ;;  %v1527_v21 = vsel %vm1499_vm0, %v3195_v1, %v3182_v29 }
  0xed   : > { %v2606_v4 = vpack.c.bf16 %v1805_v51, %v1804_v37 }
  0xee   : > { %v3366_v48 = vpop.permute.xlu1 %673  ;;  %v3368_v26 = vpop.permute.xlu0 %671  ;;  %2603 = vmatprep.subr.bf16.mxu0 %v2602_v53  ;;  %2625 = vmatprep.subr.bf16.mxu1 %v2602_v53 }
  0xef   : > { %2605 = vmatpush3.bf16.msra.mxu0 %v2602_v53  ;;  %2633 = vmatpush3.bf16.msra.mxu1 %v2602_v53  ;;  %v1810_v53 = vld [vmem:[%s4341_s1 + $0x70] sm:$0xff] }
  0xf0   : > { %1053 = vrot.lane.b32.xlu1 %v2983_v52, %s2731_s17  ;;  %1021 = vrot.lane.b32.xlu0 %v2921_v36, %s2731_s17 }
  0xf1   : > { %2607 = vmatprep.subr.bf16.mxu0 %v2606_v4  ;;  %2626 = vmatprep.subr.bf16.mxu1 %v2606_v4 }
  0xf2   : > { %v678_v2 = vpop.permute.xlu1 %677  ;;  %v676_v40 = vpop.permute.xlu0 %675 }
  0xf3   : > { %v3382_v52 = vsel %vm1532_vm1, %v3147_v28, %v678_v2  ;;  %v3386_v36 = vsel %vm1532_vm1, %v3150_v45, %v676_v40  ;;  %v1807_v28 = vld [vmem:[%s4341_s1 + $0x58] sm:$0xff]  ;;  %2609 = vmatpush3.bf16.msra.mxu0 %v2606_v4  ;;  %2634 = vmatpush3.bf16.msra.mxu1 %v2606_v4  ;;  %v1528_v2 = vsel %vm1499_vm0, %v3212_v27, %v3192_v61 }
  0xf4   : > { %1179 = vrot.lane.b32.xlu1 %v3170_v63, %s2732_s28  ;;  %1147 = vrot.lane.b32.xlu0 %v3076_v50, %s2732_s28  ;;  %v2610_v18 = vpack.c.bf16 %v1807_v28, %v1806_v5  ;;  %v4428_v28 = vld [vmem:[#allocation36_spill] sm:$0xff] }
  0xf6   : > { %v682_v17 = vpop.permute.xlu1 %681  ;;  %v680_v45 = vpop.permute.xlu0 %679  ;;  %2611 = vmatprep.subr.bf16.mxu0 %v2610_v18  ;;  %2627 = vmatprep.subr.bf16.mxu1 %v2610_v18 }
  0xf7   : > { %v3400_v63 = vsel %vm1532_vm1, %v3159_v42, %v682_v17  ;;  %v3404_v50 = vsel %vm1532_vm1, %v3162_v58, %v680_v45  ;;  %2613 = vmatpush3.bf16.msra.mxu0 %v2610_v18  ;;  %2635 = vmatpush3.bf16.msra.mxu1 %v2610_v18  ;;  %v1808_v42 = vld [vmem:[%s4341_s1 + $0x60] sm:$0xff]  ;;  %v1809_v58 = vld [vmem:[%s4341_s1 + $0x68] sm:$0xff]  ;;  %v4429_v17 = vld [vmem:[#allocation40_spill] sm:$0xff] }
  0xf8   : > { %1181 = vrot.lane.b32.xlu1 %v3167_v62, %s2732_s28  ;;  %1149 = vrot.lane.b32.xlu0 %v3073_v49, %s2732_s28  ;;  %v2614_v20 = vpack.c.bf16 %v1809_v58, %v1808_v42  ;;  %v1530_v45 = vsel %vm1499_vm0, %v4429_v17, %v4428_v28  ;;  %v4430_v58 = vld [vmem:[#allocation3_spill] sm:$0xff]  ;;  %v4437_v28 = vld [vmem:[#allocation8_spill] sm:$0xff] }
  0xfa   : > { %v686_v14 = vpop.permute.xlu1 %685  ;;  %v684_v15 = vpop.permute.xlu0 %683  ;;  %2615 = vmatprep.subr.bf16.mxu0 %v2614_v20  ;;  %2628 = vmatprep.subr.bf16.mxu1 %v2614_v20 }
  0xfb   : > { %v3418_v62 = vsel %vm1532_vm1, %v3174_v59, %v686_v14  ;;  %v3422_v49 = vsel %vm1532_vm1, %v3178_v13, %v684_v15  ;;  %v1526_v59 = vsel %vm1499_vm0, %v3198_v30, %v3184_v44  ;;  %2617 = vmatpush3.bf16.msra.mxu0 %v2614_v20  ;;  %2636 = vmatpush3.bf16.msra.mxu1 %v2614_v20  ;;  %v4431_v20 = vld [vmem:[#allocation18_spill] sm:$0xff] }
  0xfc   : > { %1307 = vrot.lane.b32.xlu1 %v2882_v25, %s2733_s16  ;;  %1275 = vrot.lane.b32.xlu0 %v2823_v9, %s2733_s16  ;;  %v1811_v9 = vld [vmem:[%s4341_s1 + $0x78] sm:$0xff]  ;;  %v1529_v44 = vsel %vm1499_vm0, %v3209_v43, %v3190_v60  ;;  %v4427_v60 = vld [vmem:[#allocation39_spill] sm:$0xff] }
  0xfd   : > { %v2618_v51 = vpack.c.bf16 %v1811_v9, %v1810_v53 }
  0xfe   : > { %v690_v13 = vpop.permute.xlu1 %689  ;;  %v688_v47 = vpop.permute.xlu0 %687 }
  0xff   : > { %v3441_v37 = vsel %vm1532_vm1, %v1527_v21, %v690_v13  ;;  %v3444_v29 = vsel %vm1532_vm1, %v1526_v59, %v688_v47  ;;  %2619 = vmatprep.subr.bf16.mxu0 %v2618_v51  ;;  %2629 = vmatprep.subr.bf16.mxu1 %v2618_v51  ;;  %v4432_v13 = vld [vmem:[#allocation16_spill] sm:$0xff]  ;;  %v4433_v47 = vld [vmem:[#allocation9_spill] sm:$0xff] }
 0x100   : > { %1277 = vrot.lane.b32.xlu1 %v2820_v8, %s2733_s16  ;;  %927 = vrot.lane.b32.xlu0 %v2872_v23, %s2730_s25  ;;  %v4426_v23 = vld [vmem:[#allocation35_spill] sm:$0xff] }
 0x101   : > { %2621 = vmatpush3.bf16.msra.mxu0 %v2618_v51  ;;  %2637 = vmatpush3.bf16.msra.mxu1 %v2618_v51  ;;  %v1531_v61 = vsel %vm1499_vm0, %v4427_v60, %v4426_v23  ;;  %v4434_v51 = vld [vmem:[#allocation17_spill] sm:$0xff] }
 0x102   : > { %v694_v40 = vpop.permute.xlu1 %693  ;;  %v692_v4 = vpop.permute.xlu0 %691 }
 0x103   : > { %v3457_v5 = vsel %vm1532_vm1, %v1529_v44, %v694_v40  ;;  %v3460_v8 = vsel %vm1532_vm1, %v1528_v2, %v692_v4  ;;  %v4435_v44 = vld [vmem:[#allocation10_spill] sm:$0xff] }
 0x104   : > { %1403 = vrot.lane.b32.xlu1 %v2944_v41, %s2734_s23  ;;  %1309 = vrot.lane.b32.xlu0 %v2879_v24, %s2733_s16 }
 0x106   : > { %v698_v18 = vpop.permute.xlu1 %697  ;;  %v696_v14 = vpop.permute.xlu0 %695 }
 0x107   : > { %v3473_v15 = vsel %vm1532_vm1, %v1531_v61, %v698_v18  ;;  %v3476_v42 = vsel %vm1532_vm1, %v1530_v45, %v696_v14  ;;  %v4436_v61 = vld [vmem:[#allocation15_spill] sm:$0xff] }
 0x108   : > { %929 = vrot.lane.b32.xlu1 %v4430_v58, %s2730_s25  ;;  %1435 = vrot.lane.b32.xlu0 %v4431_v20, %s2734_s23 }
 0x10a   : > { %v3482_v21 = vpop.permute.xlu1 %765  ;;  %v3484_v59 = vpop.permute.xlu0 %763 }
 0x10c   : > { %1055 = vrot.lane.b32.xlu1 %v4432_v13, %s2731_s17  ;;  %1023 = vrot.lane.b32.xlu0 %v4433_v47, %s2731_s17  ;;  %v4439_v47 = vld [vmem:[#allocation5_spill] sm:$0xff] }
 0x10e   : > { %v3490_v53 = vpop.permute.xlu1 %769  ;;  %v3492_v9 = vpop.permute.xlu0 %767 }
 0x110   : > { %1437 = vrot.lane.b32.xlu1 %v4434_v51, %s2734_s23  ;;  %1405 = vrot.lane.b32.xlu0 %v4435_v44, %s2734_s23 }
 0x112   : > { %v774_v2 = vpop.permute.xlu1 %773  ;;  %v772_v40 = vpop.permute.xlu0 %771 }
 0x113   : > { %v3500_v4 = vsel %vm1565_vm2, %v3250_v56, %v774_v2  ;;  %v3504_v23 = vsel %vm1565_vm2, %v3254_v57, %v772_v40  ;;  %v4444_v40 = vld [vmem:[#allocation12_spill] sm:$0xff] }
 0x114   : > { %1057 = vrot.lane.b32.xlu1 %v4436_v61, %s2731_s17  ;;  %1025 = vrot.lane.b32.xlu0 %v4437_v28, %s2731_s17 }
 0x116   : > { %v778_v45 = vpop.permute.xlu1 %777  ;;  %v776_v18 = vpop.permute.xlu0 %775 }
 0x117   : > { %v3512_v14 = vsel %vm1565_vm2, %v3260_v55, %v778_v45  ;;  %v3516_v56 = vsel %vm1565_vm2, %v3264_v31, %v776_v18 }
 0x118   : > { %1183 = vrot.lane.b32.xlu1 %v3198_v30, %s2732_s28  ;;  %1151 = vrot.lane.b32.xlu0 %v3090_v12, %s2732_s28 }
 0x11a   : > { %v782_v57 = vpop.permute.xlu1 %781  ;;  %v780_v58 = vpop.permute.xlu0 %779 }
 0x11b   : > { %v3524_v13 = vsel %vm1565_vm2, %v3277_v39, %v782_v57  ;;  %v3528_v55 = vsel %vm1565_vm2, %v3280_v54, %v780_v58  ;;  %v4447_v57 = vld [vmem:[#allocation19_spill] sm:$0xff] }
 0x11c   : > { %1185 = vrot.lane.b32.xlu1 %v3195_v1, %s2732_s28  ;;  %1153 = vrot.lane.b32.xlu0 %v3087_v3, %s2732_s28  ;;  %v4448_v58 = vld [vmem:[#allocation11_spill] sm:$0xff] }
 0x11e   : > { %v786_v30 = vpop.permute.xlu1 %785  ;;  %v784_v31 = vpop.permute.xlu0 %783 }
 0x11f   : > { %v3536_v12 = vsel %vm1565_vm2, %v3293_v33, %v786_v30  ;;  %v3540_v39 = vsel %vm1565_vm2, %v3296_v34, %v784_v31 }
 0x120   : > { %4438 = vst [vmem:[#allocation35_spill] sm:$0xff] %v3536_v12  ;;  %1311 = vrot.lane.b32.xlu1 %v4439_v47, %s2733_s16  ;;  %1279 = vrot.lane.b32.xlu0 %v2833_v11, %s2733_s16 }
 0x122   : > { %v790_v1 = vpop.permute.xlu1 %789  ;;  %v788_v54 = vpop.permute.xlu0 %787 }
 0x123   : > { %v3548_v3 = vsel %vm1565_vm2, %v3315_v22, %v790_v1  ;;  %v3552_v33 = vsel %vm1565_vm2, %v3318_v38, %v788_v54  ;;  %v4445_v38 = vld [vmem:[#allocation4_spill] sm:$0xff]  ;;  %v4452_v54 = vld [vmem:[#allocation7_spill] sm:$0xff] }
 0x124   : > { %4440 = vst [vmem:[#allocation39_spill] sm:$0xff] %v3548_v3  ;;  %4441 = vst [vmem:[#allocation36_spill] sm:$0xff] %v3552_v33  ;;  %1281 = vrot.lane.b32.xlu1 %v2830_v10, %s2733_s16  ;;  %931 = vrot.lane.b32.xlu0 %v2882_v25, %s2730_s25  ;;  %v4446_v25 = vld [vmem:[#allocation20_spill] sm:$0xff] }
 0x125   : > { %v4463_v33 = vld [vmem:[#allocation28_spill] sm:$0xff] }
 0x126   : > { %v794_v34 = vpop.permute.xlu1 %793  ;;  %v792_v2 = vpop.permute.xlu0 %791 }
 0x127   : > { %v3560_v11 = vsel %vm1565_vm2, %v3337_v6, %v794_v34  ;;  %v3564_v22 = vsel %vm1565_vm2, %v3340_v7, %v792_v2 }
 0x128   : > { %4442 = vst [vmem:[#allocation40_spill] sm:$0xff] %v3560_v11  ;;  %4443 = vst [vmem:[#allocation3_spill] sm:$0xff] %v3564_v22  ;;  %1407 = vrot.lane.b32.xlu1 %v4444_v40, %s2734_s23  ;;  %1313 = vrot.lane.b32.xlu0 %v4445_v38, %s2733_s16  ;;  %v4461_v11 = vld [vmem:[#allocation22_spill] sm:$0xff]  ;;  %v3743_v22 = vld [vmem:[%s2789_s21 + $0xf2] sm:$0xff] }
 0x12a   : > { %v3570_v10 = vpop.permute.xlu1 %797  ;;  %v3572_v61 = vpop.permute.xlu0 %795 }
 0x12c   : > { %933 = vrot.lane.b32.xlu1 %v2879_v24, %s2730_s25  ;;  %1439 = vrot.lane.b32.xlu0 %v4446_v25, %s2734_s23 }
 0x12e   : > { %v3578_v6 = vpop.permute.xlu1 %801  ;;  %v3580_v7 = vpop.permute.xlu0 %799 }
 0x130   : > { %1059 = vrot.lane.b32.xlu1 %v4431_v20, %s2731_s17  ;;  %1027 = vrot.lane.b32.xlu0 %v2944_v41, %s2731_s17 }
 0x132   : > { %v806_v28 = vpop.permute.xlu1 %805  ;;  %v804_v45 = vpop.permute.xlu0 %803 }
 0x133   : > { %v3588_v18 = vsel %vm1565_vm2, %v3382_v52, %v806_v28  ;;  %v3592_v24 = vsel %vm1565_vm2, %v3386_v36, %v804_v45  ;;  %v4456_v45 = vld [vmem:[#allocation14_spill] sm:$0xff] }
 0x134   : > { %1441 = vrot.lane.b32.xlu1 %v4447_v57, %s2734_s23  ;;  %1409 = vrot.lane.b32.xlu0 %v4448_v58, %s2734_s23 }
 0x136   : > { %v810_v20 = vpop.permute.xlu1 %809  ;;  %v808_v30 = vpop.permute.xlu0 %807 }
 0x137   : > { %v3600_v41 = vsel %vm1565_vm2, %v3400_v63, %v810_v20  ;;  %v3604_v52 = vsel %vm1565_vm2, %v3404_v50, %v808_v30  ;;  %v4457_v20 = vld [vmem:[#allocation6_spill] sm:$0xff] }
 0x138   : > { %1061 = vrot.lane.b32.xlu1 %v4434_v51, %s2731_s17  ;;  %1029 = vrot.lane.b32.xlu0 %v4435_v44, %s2731_s17 }
 0x13a   : > { %v814_v36 = vpop.permute.xlu1 %813  ;;  %v812_v31 = vpop.permute.xlu0 %811 }
 0x13b   : > { %v3612_v1 = vsel %vm1565_vm2, %v3418_v62, %v814_v36  ;;  %v3616_v63 = vsel %vm1565_vm2, %v3422_v49, %v812_v31 }
 0x13c   : > { %1187 = vrot.lane.b32.xlu1 %v3212_v27, %s2732_s28  ;;  %1155 = vrot.lane.b32.xlu0 %v3104_v19, %s2732_s28 }
 0x13e   : > { %v818_v50 = vpop.permute.xlu1 %817  ;;  %v816_v51 = vpop.permute.xlu0 %815 }
 0x13f   : > { %v3624_v44 = vsel %vm1565_vm2, %v3441_v37, %v818_v50  ;;  %v3628_v62 = vsel %vm1565_vm2, %v3444_v29, %v816_v51  ;;  %v4453_v29 = vld [vmem:[#allocation2_spill] sm:$0xff]  ;;  %v4460_v51 = vld [vmem:[#allocation13_spill] sm:$0xff] }
 0x140   : > { %4449 = vst [vmem:[#allocation18_spill] sm:$0xff] %v3624_v44  ;;  %1189 = vrot.lane.b32.xlu1 %v3209_v43, %s2732_s28  ;;  %1157 = vrot.lane.b32.xlu0 %v3101_v16, %s2732_s28  ;;  %v3647_v43 = vld [vmem:[%s2789_s21 + $0x69] sm:$0xff] }
 0x142   : > { %v822_v27 = vpop.permute.xlu1 %821  ;;  %v820_v49 = vpop.permute.xlu0 %819 }
 0x143   : > { %v3636_v19 = vsel %vm1565_vm2, %v3457_v5, %v822_v27  ;;  %v3640_v37 = vsel %vm1565_vm2, %v3460_v8, %v820_v49 }
 0x144   : > { %4450 = vst [vmem:[#allocation16_spill] sm:$0xff] %v3636_v19  ;;  %4451 = vst [vmem:[#allocation9_spill] sm:$0xff] %v3640_v37  ;;  %1315 = vrot.lane.b32.xlu1 %v4452_v54, %s2733_s16  ;;  %1283 = vrot.lane.b32.xlu0 %v4453_v29, %s2733_s16  ;;  %v4464_v37 = vld [vmem:[#allocation32_spill] sm:$0xff] }
 0x146   : > { %v826_v34 = vpop.permute.xlu1 %825  ;;  %v824_v16 = vpop.permute.xlu0 %823 }
 0x147   : > { %v3651_v2 = vsel %vm1565_vm2, %v3473_v15, %v826_v34  ;;  %v3655_v5 = vsel %vm1565_vm2, %v3476_v42, %v824_v16  ;;  %v4458_v42 = vld [vmem:[#allocation24_spill] sm:$0xff]  ;;  %v2272_v16 = vld [vmem:[%s2789_s21 + $0x61] sm:$0xff] }
 0x148   : > { %4454 = vst [vmem:[#allocation17_spill] sm:$0xff] %v3651_v2  ;;  %4455 = vst [vmem:[#allocation10_spill] sm:$0xff] %v3655_v5  ;;  %1285 = vrot.lane.b32.xlu1 %v3647_v43, %s2733_s16  ;;  %935 = vrot.lane.b32.xlu0 %v4439_v47, %s2730_s25  ;;  %v3746_v5 = vld [vmem:[%s2789_s21 + $0x72] sm:$0xff] }
 0x14a   : > { %v3661_v8 = vpop.permute.xlu1 %893  ;;  %v892_v28 = vpop.permute.xlu0 %891 }
 0x14c   : > { %1411 = vrot.lane.b32.xlu1 %v4456_v45, %s2734_s23  ;;  %1317 = vrot.lane.b32.xlu0 %v4457_v20, %s2733_s16  ;;  %v3729_v20 = vld [vmem:[%s2789_s21 + $0xf9] sm:$0xff] }
 0x14e   : > { %v3667_v15 = vpop.permute.xlu1 %897  ;;  %v3669_v30 = vpop.permute.xlu0 %895 }
 0x150   : > { %937 = vrot.lane.b32.xlu1 %v4445_v38, %s2730_s25  ;;  %1443 = vrot.lane.b32.xlu0 %v4458_v42, %s2734_s23  ;;  %v4459_v38 = vld [vmem:[#allocation23_spill] sm:$0xff]  ;;  %v3732_v42 = vld [vmem:[%s2789_s21 + $0x79] sm:$0xff] }
 0x152   : > { %v3675_v47 = vpop.permute.xlu1 %901  ;;  %v3677_v36 = vpop.permute.xlu0 %899 }
 0x154   : > { %1063 = vrot.lane.b32.xlu1 %v4446_v25, %s2731_s17  ;;  %1031 = vrot.lane.b32.xlu0 %v4444_v40, %s2731_s17 }
 0x156   : > { %v3683_v31 = vpop.permute.xlu1 %905  ;;  %v3685_v50 = vpop.permute.xlu0 %903 }
 0x158   : > { %1445 = vrot.lane.b32.xlu1 %v4459_v38, %s2734_s23  ;;  %1413 = vrot.lane.b32.xlu0 %v4460_v51, %s2734_s23 }
 0x15a   : > { %v3691_v27 = vpop.permute.xlu1 %925  ;;  %v924_v49 = vpop.permute.xlu0 %923 }
 0x15c   : > { %1065 = vrot.lane.b32.xlu1 %v4447_v57, %s2731_s17  ;;  %1033 = vrot.lane.b32.xlu0 %v4448_v58, %s2731_s17  ;;  %v3710_v57 = vld [vmem:[%s2789_s21 + $0xf1] sm:$0xff] }
 0x15d   : > { %v3713_v58 = vld [vmem:[%s2789_s21 + $0x71] sm:$0xff] }
 0x15e   : > { %v1052_v40 = vpop.permute.xlu1 %1051  ;;  %v1020_v25 = vpop.permute.xlu0 %1019 }
 0x160   : > { %1191 = vrot.lane.b32.xlu1 %v4429_v17, %s2732_s28  ;;  %1159 = vrot.lane.b32.xlu0 %v3118_v0, %s2732_s28  ;;  %v2288_v0 = vld [vmem:[%s2789_s21 + $0xe1] sm:$0xff] }
 0x162   : > { %v3701_v54 = vpop.permute.xlu1 %1053  ;;  %v3703_v29 = vpop.permute.xlu0 %1021 }
 0x164   : > { %1193 = vrot.lane.b32.xlu1 %v4427_v60, %s2732_s28  ;;  %1161 = vrot.lane.b32.xlu0 %v3115_v32, %s2732_s28  ;;  %v171_v32 = vld [vmem:[%s2789_s21] sm:$0xff] }
 0x165   : > { %v1500_v2 = vsel %vm1499_vm0, %v171_v32, %v4461_v11 }
 0x166   : > { %v1180_v17 = vpop.permute.xlu1 %1179  ;;  %v1148_v34 = vpop.permute.xlu0 %1147 }
 0x168   : > { %1319 = vrot.lane.b32.xlu1 %v3710_v57, %s2733_s16  ;;  %1287 = vrot.lane.b32.xlu0 %v3713_v58, %s2733_s16 }
 0x16a   : > { %v3721_v60 = vpop.permute.xlu1 %1181  ;;  %v3723_v45 = vpop.permute.xlu0 %1149 }
 0x16c   : > { %939 = vrot.lane.b32.xlu1 %v2288_v0, %s2730_s25  ;;  %907 = vrot.lane.b32.xlu0 %v2272_v16, %s2730_s25  ;;  %v4462_v0 = vld [vmem:[#allocation38_spill] sm:$0xff] }
 0x16d   : > { %v1533_v16 = vsel %vm1532_vm1, %v1500_v2, %v4462_v0  ;;  %v1516_v2 = vsel %vm1499_vm0, %v4464_v37, %v4463_v33 }
 0x16e   : > { %v1308_v38 = vpop.permute.xlu1 %1307  ;;  %v1276_v51 = vpop.permute.xlu0 %1275  ;;  %v1566_v3 = vsel %vm1565_vm2, %v1533_v16, %v3484_v59  ;;  %v1549_v59 = vsel %vm1532_vm1, %v1516_v2, %v3354_v46  ;;  %v172_v46 = vld [vmem:[%s2789_s21 + $0x8] sm:$0xff] }
 0x16f   : > { %v1599_v19 = vsel %vm1598_vm3, %v1566_v3, %v892_v28  ;;  %v2289_v28 = vld [vmem:[%s2789_s21 + $0xe9] sm:$0xff]  ;;  %v1582_v33 = vsel %vm1565_vm2, %v1549_v59, %v3572_v61  ;;  %v4465_v59 = vld [vmem:[#allocation26_spill] sm:$0xff] }
 0x170   : > { %1321 = vrot.lane.b32.xlu1 %v3729_v20, %s2733_s16  ;;  %1289 = vrot.lane.b32.xlu0 %v3732_v42, %s2733_s16  ;;  %v1632_v0 = vsel %vm1631_vm4, %v1599_v19, %v1020_v25  ;;  %v1615_v16 = vsel %vm1598_vm3, %v1582_v33, %v924_v49 }
 0x171   : > { %v1665_v3 = vsel %vm1664_vm5, %v1632_v0, %v1148_v34  ;;  %v1648_v44 = vsel %vm1631_vm4, %v1615_v16, %v1052_v40  ;;  %v2321_v34 = vld [vmem:[%s2789_s21 + $0xe2] sm:$0xff] }
 0x172   : > { %v1278_v11 = vpop.permute.xlu1 %1277  ;;  %v3750_v32 = vpop.permute.xlu0 %927  ;;  %v1698_v19 = vsel %vm1697_vm6, %v1665_v3, %v1276_v51  ;;  %v1681_v61 = vsel %vm1664_vm5, %v1648_v44, %v1180_v17  ;;  %v2305_v51 = vld [vmem:[%s2789_s21 + $0x62] sm:$0xff]  ;;  %v1501_v3 = vsel %vm1499_vm0, %v172_v46, %v4465_v59 }
 0x173   : > { %v1714_v49 = vsel %vm1697_vm6, %v1681_v61, %v1308_v38  ;;  %v3796_v38 = vld [vmem:[%s2789_s21 + $0xfa] sm:$0xff] }
 0x174   : > { %1447 = vrot.lane.b32.xlu1 %v3743_v22, %s2734_s23  ;;  %1415 = vrot.lane.b32.xlu0 %v3746_v5, %s2734_s23 }
 0x176   : > { %v1404_v37 = vpop.permute.xlu1 %1403  ;;  %v1310_v25 = vpop.permute.xlu0 %1309 }
 0x177   : > { %v1731_v12 = vsel %vm1730_vm7, %v1698_v19, %v1404_v37  ;;  %v3799_v19 = vld [vmem:[%s2789_s21 + $0x7a] sm:$0xff] }
 0x178   : > { %941 = vrot.lane.b32.xlu1 %v2289_v28, %s2730_s25  ;;  %909 = vrot.lane.b32.xlu0 %v3647_v43, %s2730_s25  ;;  %v4466_v43 = vld [vmem:[#allocation27_spill] sm:$0xff] }
 0x179   : > { %2542 = vmatprep.mubr.msk.f32.mxu0 %vm1763_vm8, %v1731_v12  ;;  %v4467_v28 = vld [vmem:[#allocation31_spill] sm:$0xff]  ;;  %v4468_v12 = vld [vmem:[#allocation37_spill] sm:$0xff] }
 0x17a   : > { %v3780_v2 = vpop.permute.xlu1 %929  ;;  %v1436_v0 = vpop.permute.xlu0 %1435  ;;  %v1517_v33 = vsel %vm1499_vm0, %v4467_v28, %v4466_v43  ;;  %v1534_v44 = vsel %vm1532_vm1, %v1501_v3, %v4468_v12  ;;  %v2339_v43 = vld [vmem:[%s2789_s21 + $0x88] sm:$0xff]  ;;  %v4470_v12 = vld [vmem:[#allocation41_spill] sm:$0xff] }
 0x17b   : > { %v1747_v40 = vsel %vm1730_vm7, %v1714_v49, %v1436_v0  ;;  %v1550_v17 = vsel %vm1532_vm1, %v1517_v33, %v3352_v35  ;;  %v1567_v37 = vsel %vm1565_vm2, %v1534_v44, %v3482_v21  ;;  %v3846_v44 = vld [vmem:[%s2789_s21 + $0x101] sm:$0xff] }
 0x17c   : > { %1067 = vrot.lane.b32.xlu1 %v2321_v34, %s2731_s17  ;;  %1035 = vrot.lane.b32.xlu0 %v2305_v51, %s2731_s17  ;;  %v1583_v16 = vsel %vm1565_vm2, %v1550_v17, %v3570_v10  ;;  %v1600_v35 = vsel %vm1598_vm3, %v1567_v37, %v3661_v8  ;;  %v2322_v8 = vld [vmem:[%s2789_s21 + $0xea] sm:$0xff]  ;;  %v3849_v17 = vld [vmem:[%s2789_s21 + $0x81] sm:$0xff] }
 0x17d   : > { %2566 = vmatprep.mubr.msk.f32.mxu1 %vm1763_vm8, %v1747_v40  ;;  %v1616_v34 = vsel %vm1598_vm3, %v1583_v16, %v3691_v27  ;;  %v1633_v49 = vsel %vm1631_vm4, %v1600_v35, %v3703_v29  ;;  %v2306_v27 = vld [vmem:[%s2789_s21 + $0x6a] sm:$0xff] }
 0x17e   : > { %v3805_v46 = vpop.permute.xlu1 %1055  ;;  %v1024_v61 = vpop.permute.xlu0 %1023  ;;  %v1649_v51 = vsel %vm1631_vm4, %v1616_v34, %v3701_v54  ;;  %v1666_v10 = vsel %vm1664_vm5, %v1633_v49, %v3723_v45  ;;  %v173_v35 = vld [vmem:[%s2789_s21 + $0x10] sm:$0xff]  ;;  %v4471_v49 = vld [vmem:[#allocation21_spill] sm:$0xff] }
 0x17f   : > { %v1682_v21 = vsel %vm1664_vm5, %v1649_v51, %v3721_v60  ;;  %v1699_v54 = vsel %vm1697_vm6, %v1666_v10, %v1278_v11  ;;  %v2338_v60 = vld [vmem:[%s2789_s21 + $0x80] sm:$0xff]  ;;  %v4472_v10 = vld [vmem:[#allocation44_spill] sm:$0xff] }
 0x180   : > { %1449 = vrot.lane.b32.xlu1 %v3796_v38, %s2734_s23  ;;  %1417 = vrot.lane.b32.xlu0 %v3799_v19, %s2734_s23  ;;  %v1715_v29 = vsel %vm1697_vm6, %v1682_v21, %v1310_v25  ;;  %v4469_v25 = vld [vmem:[#allocation42_spill] sm:$0xff]  ;;  %v1502_v21 = vsel %vm1499_vm0, %v173_v35, %v4471_v49 }
 0x182   : > { %v1438_v0 = vpop.permute.xlu1 %1437  ;;  %v1406_v40 = vpop.permute.xlu0 %1405 }
 0x183   : > { %v1748_v59 = vsel %vm1730_vm7, %v1715_v29, %v1438_v0  ;;  %v1732_v3 = vsel %vm1730_vm7, %v1699_v54, %v1406_v40  ;;  %v3868_v54 = vld [vmem:[%s2789_s21 + $0x89] sm:$0xff] }
 0x184   : > { %1069 = vrot.lane.b32.xlu1 %v2322_v8, %s2731_s17  ;;  %1037 = vrot.lane.b32.xlu0 %v2306_v27, %s2731_s17  ;;  %v1535_v8 = vsel %vm1532_vm1, %v1502_v21, %v4472_v10  ;;  %v3865_v27 = vld [vmem:[%s2789_s21 + $0x109] sm:$0xff] }
 0x185   : > { %2543 = vmatmul.mubr.msk.f32.vlgmr.msra.gmra.mrb[0].mxu0 %vm1763_vm8, %v1732_v3  ;;  %2567 = vmatmul.mubr.msk.f32.vlgmr.msra.gmra.mrb[0].mxu1 %vm1763_vm8, %v1748_v59  ;;  %v1568_v29 = vsel %vm1565_vm2, %v1535_v8, %v3492_v9  ;;  %v4473_v59 = vld [vmem:[#allocation30_spill] sm:$0xff] }
 0x186   : > { %v3834_v45 = vpop.permute.xlu1 %1057  ;;  %v3836_v11 = vpop.permute.xlu0 %1025  ;;  %v4474_v3 = vld [vmem:[#allocation34_spill] sm:$0xff] }
 0x188   : > { %1195 = vrot.lane.b32.xlu1 %v4469_v25, %s2732_s28  ;;  %1163 = vrot.lane.b32.xlu0 %v2338_v60, %s2732_s28 }
 0x18a   : > { %v1184_v28 = vpop.permute.xlu1 %1183  ;;  %v1152_v33 = vpop.permute.xlu0 %1151 }
 0x18c   : > { %1197 = vrot.lane.b32.xlu1 %v4470_v12, %s2732_s28  ;;  %1165 = vrot.lane.b32.xlu0 %v2339_v43, %s2732_s28  ;;  %v3888_v43 = vld [vmem:[%s2789_s21 + $0x102] sm:$0xff] }
 0x18e   : > { %v1186_v37 = vpop.permute.xlu1 %1185  ;;  %v1154_v16 = vpop.permute.xlu0 %1153 }
 0x190   : > { %1323 = vrot.lane.b32.xlu1 %v3846_v44, %s2733_s16  ;;  %1291 = vrot.lane.b32.xlu0 %v3849_v17, %s2733_s16 }
 0x192   : > { %v1312_v34 = vpop.permute.xlu1 %1311  ;;  %v1280_v51 = vpop.permute.xlu0 %1279 }
 0x194   : > { %943 = vrot.lane.b32.xlu1 %v3710_v57, %s2730_s25  ;;  %911 = vrot.lane.b32.xlu0 %v3713_v58, %s2730_s25  ;;  %v1601_v57 = vsel %vm1598_vm3, %v1568_v29, %v3669_v30  ;;  %v1518_v58 = vsel %vm1499_vm0, %v4474_v3, %v4473_v59  ;;  %v3891_v30 = vld [vmem:[%s2789_s21 + $0x82] sm:$0xff]  ;;  %v4476_v59 = vld [vmem:[#allocation29_spill] sm:$0xff] }
 0x195   : > { %v1634_v60 = vsel %vm1631_vm4, %v1601_v57, %v1024_v61  ;;  %v1551_v9 = vsel %vm1532_vm1, %v1518_v58, %v3368_v26  ;;  %v4475_v57 = vld [vmem:[#allocation25_spill] sm:$0xff] }
 0x196   : > { %v1282_v0 = vpop.permute.xlu1 %1281  ;;  %v3872_v40 = vpop.permute.xlu0 %931  ;;  %v1667_v25 = vsel %vm1664_vm5, %v1634_v60, %v1152_v33  ;;  %v1584_v12 = vsel %vm1565_vm2, %v1551_v9, %v3580_v7  ;;  %v174_v33 = vld [vmem:[%s2789_s21 + $0x18] sm:$0xff] }
 0x197   : > { %v1700_v61 = vsel %vm1697_vm6, %v1667_v25, %v1280_v51  ;;  %v1617_v21 = vsel %vm1598_vm3, %v1584_v12, %v3750_v32  ;;  %v4477_v3 = vld [vmem:[#allocation33_spill] sm:$0xff] }
 0x198   : > { %1325 = vrot.lane.b32.xlu1 %v3865_v27, %s2733_s16  ;;  %1293 = vrot.lane.b32.xlu0 %v3868_v54, %s2733_s16  ;;  %v1650_v26 = vsel %vm1631_vm4, %v1617_v21, %v3805_v46  ;;  %v1503_v46 = vsel %vm1499_vm0, %v174_v33, %v4475_v57  ;;  %v1519_v58 = vsel %vm1499_vm0, %v4477_v3, %v4476_v59 }
 0x199   : > { %v1683_v7 = vsel %vm1664_vm5, %v1650_v26, %v1184_v28  ;;  %v4478_v28 = vld [vmem:[#allocation43_spill] sm:$0xff]  ;;  %v1552_v60 = vsel %vm1532_vm1, %v1519_v58, %v3366_v48  ;;  %v1603_v58 = vsel %vm1598_vm3, %v3504_v23, %v3677_v36  ;;  %v1619_v36 = vsel %vm1598_vm3, %v3592_v24, %v3872_v40 }
 0x19a   : > { %v1408_v35 = vpop.permute.xlu1 %1407  ;;  %v1314_v49 = vpop.permute.xlu0 %1313  ;;  %v1716_v51 = vsel %vm1697_vm6, %v1683_v7, %v1312_v34  ;;  %v1536_v34 = vsel %vm1532_vm1, %v1503_v46, %v4478_v28  ;;  %v1585_v25 = vsel %vm1565_vm2, %v1552_v60, %v3578_v6  ;;  %v2357_v7 = vld [vmem:[%s2789_s21 + $0x118] sm:$0xff] }
 0x19b   : > { %v1733_v10 = vsel %vm1730_vm7, %v1700_v61, %v1408_v35  ;;  %v1569_v9 = vsel %vm1565_vm2, %v1536_v34, %v3490_v53  ;;  %v1618_v61 = vsel %vm1598_vm3, %v1585_v25, %v3780_v2  ;;  %v3948_v2 = vld [vmem:[%s2789_s21 + $0x8a] sm:$0xff]  ;;  %v3994_v60 = vld [vmem:[%s2789_s21 + $0x119] sm:$0xff] }
 0x19c   : > { %1451 = vrot.lane.b32.xlu1 %v3888_v43, %s2734_s23  ;;  %1419 = vrot.lane.b32.xlu0 %v3891_v30, %s2734_s23  ;;  %v1651_v35 = vsel %vm1631_vm4, %v1618_v61, %v3834_v45  ;;  %v4012_v61 = vld [vmem:[%s2789_s21 + $0x112] sm:$0xff] }
 0x19d   : > { %2545 = vmatprep.mubr.msk.f32.mxu0 %vm1763_vm8, %v1733_v10  ;;  %v1684_v53 = vsel %vm1664_vm5, %v1651_v35, %v1186_v37  ;;  %v4015_v35 = vld [vmem:[%s2789_s21 + $0x92] sm:$0xff] }
 0x19e   : > { %v3909_v8 = vpop.permute.xlu1 %933  ;;  %v1440_v32 = vpop.permute.xlu0 %1439 }
 0x19f   : > { %v1749_v29 = vsel %vm1730_vm7, %v1716_v51, %v1440_v32  ;;  %v2341_v51 = vld [vmem:[%s2789_s21 + $0x98] sm:$0xff] }
 0x1a0   : > { %945 = vrot.lane.b32.xlu1 %v3729_v20, %s2730_s25  ;;  %913 = vrot.lane.b32.xlu0 %v3732_v42, %s2730_s25  ;;  %v1602_v42 = vsel %vm1598_vm3, %v1569_v9, %v3667_v15  ;;  %v3945_v15 = vld [vmem:[%s2789_s21 + $0x10a] sm:$0xff]  ;;  %v3997_v9 = vld [vmem:[%s2789_s21 + $0x99] sm:$0xff] }
 0x1a1   : > { %2569 = vmatprep.mubr.msk.f32.mxu1 %vm1763_vm8, %v1749_v29  ;;  %v1635_v48 = vsel %vm1631_vm4, %v1602_v42, %v3836_v11  ;;  %v1717_v11 = vsel %vm1697_vm6, %v1684_v53, %v1314_v49  ;;  %v2340_v49 = vld [vmem:[%s2789_s21 + $0x90] sm:$0xff] }
 0x1a2   : > { %v1060_v20 = vpop.permute.xlu1 %1059  ;;  %v1028_v12 = vpop.permute.xlu0 %1027  ;;  %v1668_v6 = vsel %vm1664_vm5, %v1635_v48, %v1154_v16 }
 0x1a3   : > { %v1701_v45 = vsel %vm1697_vm6, %v1668_v6, %v1282_v0  ;;  %v2356_v0 = vld [vmem:[%s2789_s21 + $0x110] sm:$0xff]  ;;  %v1636_v28 = vsel %vm1631_vm4, %v1603_v58, %v1028_v12  ;;  %v1652_v12 = vsel %vm1631_vm4, %v1619_v36, %v1060_v20 }
 0x1a4   : > { %1071 = vrot.lane.b32.xlu1 %v3743_v22, %s2731_s17  ;;  %1039 = vrot.lane.b32.xlu0 %v3746_v5, %s2731_s17 }
 0x1a6   : > { %v1442_v21 = vpop.permute.xlu1 %1441  ;;  %v1410_v10 = vpop.permute.xlu0 %1409 }
 0x1a7   : > { %v1750_v22 = vsel %vm1730_vm7, %v1717_v11, %v1442_v21  ;;  %v1734_v5 = vsel %vm1730_vm7, %v1701_v45, %v1410_v10  ;;  %v1604_v45 = vsel %vm1598_vm3, %v3500_v4, %v3675_v47  ;;  %v1620_v11 = vsel %vm1598_vm3, %v3588_v18, %v3909_v8 }
 0x1a8   : > { %1453 = vrot.lane.b32.xlu1 %v3945_v15, %s2734_s23  ;;  %1421 = vrot.lane.b32.xlu0 %v3948_v2, %s2734_s23 }
 0x1a9   : > { %2546 = vmatmul.mubr.msk.f32.gmra.mrb[2].mxu0 %vm1763_vm8, %v1734_v5  ;;  %2570 = vmatmul.mubr.msk.f32.gmra.mrb[2].mxu1 %vm1763_vm8, %v1750_v22 }
 0x1aa   : > { %v1062_v37 = vpop.permute.xlu1 %1061  ;;  %v1030_v16 = vpop.permute.xlu0 %1029 }
 0x1ab   : > { %v1653_v21 = vsel %vm1631_vm4, %v1620_v11, %v1062_v37  ;;  %v1637_v10 = vsel %vm1631_vm4, %v1604_v45, %v1030_v16 }
 0x1ac   : > { %1073 = vrot.lane.b32.xlu1 %v3796_v38, %s2731_s17  ;;  %1041 = vrot.lane.b32.xlu0 %v3799_v19, %s2731_s17  ;;  %v3973_v38 = vld [vmem:[%s2789_s21 + $0x111] sm:$0xff] }
 0x1ad   : > { %v3976_v19 = vld [vmem:[%s2789_s21 + $0x91] sm:$0xff] }
 0x1ae   : > { %v1188_v26 = vpop.permute.xlu1 %1187  ;;  %v1156_v33 = vpop.permute.xlu0 %1155 }
 0x1af   : > { %v1669_v34 = vsel %vm1664_vm5, %v1636_v28, %v1156_v33  ;;  %v2342_v33 = vld [vmem:[%s2789_s21 + $0xa0] sm:$0xff] }
 0x1b0   : > { %1199 = vrot.lane.b32.xlu1 %v2356_v0, %s2732_s28  ;;  %1167 = vrot.lane.b32.xlu0 %v2340_v49, %s2732_s28 }
 0x1b2   : > { %v1190_v32 = vpop.permute.xlu1 %1189  ;;  %v1158_v29 = vpop.permute.xlu0 %1157 }
 0x1b3   : > { %v1686_v22 = vsel %vm1664_vm5, %v1653_v21, %v1190_v32  ;;  %v1670_v4 = vsel %vm1664_vm5, %v1637_v10, %v1158_v29  ;;  %v2359_v32 = vld [vmem:[%s2789_s21 + $0x128] sm:$0xff]  ;;  %v1606_v21 = vsel %vm1598_vm3, %v3512_v14, %v3683_v31 }
 0x1b4   : > { %1201 = vrot.lane.b32.xlu1 %v2357_v7, %s2732_s28  ;;  %1169 = vrot.lane.b32.xlu0 %v2341_v51, %s2732_s28  ;;  %v2343_v29 = vld [vmem:[%s2789_s21 + $0xa8] sm:$0xff] }
 0x1b6   : > { %v1316_v57 = vpop.permute.xlu1 %1315  ;;  %v1284_v46 = vpop.permute.xlu0 %1283 }
 0x1b7   : > { %v1702_v25 = vsel %vm1697_vm6, %v1669_v34, %v1284_v46 }
 0x1b8   : > { %1327 = vrot.lane.b32.xlu1 %v3973_v38, %s2733_s16  ;;  %1295 = vrot.lane.b32.xlu0 %v3976_v19, %s2733_s16 }
 0x1ba   : > { %v1286_v59 = vpop.permute.xlu1 %1285  ;;  %v3982_v3 = vpop.permute.xlu0 %935 }
 0x1bb   : > { %v1703_v47 = vsel %vm1697_vm6, %v1670_v4, %v1286_v59  ;;  %v2375_v59 = vld [vmem:[%s2789_s21 + $0xa1] sm:$0xff] }
 0x1bc   : > { %947 = vrot.lane.b32.xlu1 %v3846_v44, %s2730_s25  ;;  %915 = vrot.lane.b32.xlu0 %v3849_v17, %s2730_s25  ;;  %v1685_v17 = vsel %vm1664_vm5, %v1652_v12, %v1188_v26  ;;  %v2358_v26 = vld [vmem:[%s2789_s21 + $0x120] sm:$0xff]  ;;  %v2376_v12 = vld [vmem:[%s2789_s21 + $0xa9] sm:$0xff] }
 0x1bd   : > { %v1718_v24 = vsel %vm1697_vm6, %v1685_v17, %v1316_v57 }
 0x1be   : > { %v1412_v42 = vpop.permute.xlu1 %1411  ;;  %v1318_v23 = vpop.permute.xlu0 %1317 }
 0x1bf   : > { %v1735_v44 = vsel %vm1730_vm7, %v1702_v25, %v1412_v42  ;;  %v1719_v18 = vsel %vm1697_vm6, %v1686_v22, %v1318_v23  ;;  %v1605_v25 = vsel %vm1598_vm3, %v3516_v56, %v3685_v50  ;;  %v1621_v42 = vsel %vm1598_vm3, %v3604_v52, %v3982_v3  ;;  %v2392_v50 = vld [vmem:[%s2789_s21 + $0x129] sm:$0xff] }
 0x1c0   : > { %1329 = vrot.lane.b32.xlu1 %v3994_v60, %s2733_s16  ;;  %1297 = vrot.lane.b32.xlu0 %v3997_v9, %s2733_s16 }
 0x1c1   : > { %2548 = vmatprep.mubr.msk.f32.mxu0 %vm1763_vm8, %v1735_v44 }
 0x1c2   : > { %v4018_v40 = vpop.permute.xlu1 %937  ;;  %v1444_v48 = vpop.permute.xlu0 %1443 }
 0x1c3   : > { %v1751_v20 = vsel %vm1730_vm7, %v1718_v24, %v1444_v48  ;;  %v1622_v10 = vsel %vm1598_vm3, %v3600_v41, %v4018_v40 }
 0x1c4   : > { %1455 = vrot.lane.b32.xlu1 %v4012_v61, %s2734_s23  ;;  %1423 = vrot.lane.b32.xlu0 %v4015_v35, %s2734_s23 }
 0x1c5   : > { %2572 = vmatprep.mubr.msk.f32.mxu1 %vm1763_vm8, %v1751_v20  ;;  %v2408_v20 = vld [vmem:[%s2789_s21 + $0xa2] sm:$0xff] }
 0x1c6   : > { %v1064_v53 = vpop.permute.xlu1 %1063  ;;  %v1032_v6 = vpop.permute.xlu0 %1031 }
 0x1c7   : > { %v1654_v23 = vsel %vm1631_vm4, %v1621_v42, %v1064_v53  ;;  %v1638_v36 = vsel %vm1631_vm4, %v1605_v25, %v1032_v6 }
 0x1c8   : > { %949 = vrot.lane.b32.xlu1 %v3865_v27, %s2730_s25  ;;  %917 = vrot.lane.b32.xlu0 %v3868_v54, %s2730_s25  ;;  %v4051_v27 = vld [vmem:[%s2789_s21 + $0x11a] sm:$0xff] }
 0x1c9   : > { %v4054_v54 = vld [vmem:[%s2789_s21 + $0x9a] sm:$0xff] }
 0x1ca   : > { %v1446_v8 = vpop.permute.xlu1 %1445  ;;  %v1414_v5 = vpop.permute.xlu0 %1413 }
 0x1cb   : > { %v1752_v37 = vsel %vm1730_vm7, %v1719_v18, %v1446_v8  ;;  %v1736_v16 = vsel %vm1730_vm7, %v1703_v47, %v1414_v5 }
 0x1cc   : > { %1075 = vrot.lane.b32.xlu1 %v3888_v43, %s2731_s17  ;;  %1043 = vrot.lane.b32.xlu0 %v3891_v30, %s2731_s17 }
 0x1cd   : > { %2549 = vmatmul.mubr.msk.f32.gmra.mrb[4].mxu0 %vm1763_vm8, %v1736_v16  ;;  %2573 = vmatmul.mubr.msk.f32.gmra.mrb[4].mxu1 %vm1763_vm8, %v1752_v37 }
 0x1ce   : > { %v1066_v0 = vpop.permute.xlu1 %1065  ;;  %v1034_v49 = vpop.permute.xlu0 %1033 }
 0x1cf   : > { %v1655_v22 = vsel %vm1631_vm4, %v1622_v10, %v1066_v0  ;;  %v1639_v4 = vsel %vm1631_vm4, %v1606_v21, %v1034_v49  ;;  %v2344_v49 = vld [vmem:[%s2789_s21 + $0xb0] sm:$0xff] }
 0x1d0   : > { %1457 = vrot.lane.b32.xlu1 %v4051_v27, %s2734_s23  ;;  %1425 = vrot.lane.b32.xlu0 %v4054_v54, %s2734_s23 }
 0x1d2   : > { %v1192_v43 = vpop.permute.xlu1 %1191  ;;  %v1160_v30 = vpop.permute.xlu0 %1159 }
 0x1d3   : > { %v1687_v44 = vsel %vm1664_vm5, %v1654_v23, %v1192_v43  ;;  %v1671_v56 = vsel %vm1664_vm5, %v1638_v36, %v1160_v30 }
 0x1d4   : > { %1077 = vrot.lane.b32.xlu1 %v3945_v15, %s2731_s17  ;;  %1045 = vrot.lane.b32.xlu0 %v3948_v2, %s2731_s17  ;;  %v2391_v15 = vld [vmem:[%s2789_s21 + $0x121] sm:$0xff] }
 0x1d6   : > { %v1194_v7 = vpop.permute.xlu1 %1193  ;;  %v1162_v51 = vpop.permute.xlu0 %1161 }
 0x1d7   : > { %v1688_v47 = vsel %vm1664_vm5, %v1655_v22, %v1194_v7  ;;  %v1672_v14 = vsel %vm1664_vm5, %v1639_v4, %v1162_v51 }
 0x1d8   : > { %1203 = vrot.lane.b32.xlu1 %v2358_v26, %s2732_s28  ;;  %1171 = vrot.lane.b32.xlu0 %v2342_v33, %s2732_s28  ;;  %v2361_v26 = vld [vmem:[%s2789_s21 + $0x138] sm:$0xff] }
 0x1d9   : > { %v2345_v33 = vld [vmem:[%s2789_s21 + $0xb8] sm:$0xff] }
 0x1da   : > { %v1320_v57 = vpop.permute.xlu1 %1319  ;;  %v1288_v46 = vpop.permute.xlu0 %1287 }
 0x1db   : > { %v1720_v52 = vsel %vm1697_vm6, %v1687_v44, %v1320_v57  ;;  %v1704_v3 = vsel %vm1697_vm6, %v1671_v56, %v1288_v46  ;;  %v2394_v57 = vld [vmem:[%s2789_s21 + $0x139] sm:$0xff] }
 0x1dc   : > { %1205 = vrot.lane.b32.xlu1 %v2359_v32, %s2732_s28  ;;  %1173 = vrot.lane.b32.xlu0 %v2343_v29, %s2732_s28  ;;  %v2378_v46 = vld [vmem:[%s2789_s21 + $0xb9] sm:$0xff] }
 0x1dd   : > { %v2426_v44 = vld [vmem:[%s2789_s21 + $0x132] sm:$0xff] }
 0x1de   : > { %v4074_v2 = vpop.permute.xlu1 %939  ;;  %v4076_v58 = vpop.permute.xlu0 %907 }
 0x1e0   : > { %1331 = vrot.lane.b32.xlu1 %v2391_v15, %s2733_s16  ;;  %1299 = vrot.lane.b32.xlu0 %v2375_v59, %s2733_s16 }
 0x1e2   : > { %v1322_v28 = vpop.permute.xlu1 %1321  ;;  %v1290_v34 = vpop.permute.xlu0 %1289 }
 0x1e3   : > { %v1721_v31 = vsel %vm1697_vm6, %v1688_v47, %v1322_v28  ;;  %v1705_v41 = vsel %vm1697_vm6, %v1672_v14, %v1290_v34  ;;  %v1623_v28 = vsel %vm1598_vm3, %v3616_v63, %v4074_v2  ;;  %v1607_v34 = vsel %vm1598_vm3, %v3528_v55, %v4076_v58  ;;  %v2410_v63 = vld [vmem:[%s2789_s21 + $0xb2] sm:$0xff] }
 0x1e4   : > { %951 = vrot.lane.b32.xlu1 %v3973_v38, %s2730_s25  ;;  %919 = vrot.lane.b32.xlu0 %v3976_v19, %s2730_s25  ;;  %v2424_v19 = vld [vmem:[%s2789_s21 + $0x122] sm:$0xff] }
 0x1e6   : > { %v1448_v17 = vpop.permute.xlu1 %1447  ;;  %v1416_v24 = vpop.permute.xlu0 %1415 }
 0x1e7   : > { %v1753_v48 = vsel %vm1730_vm7, %v1720_v52, %v1448_v17  ;;  %v1737_v38 = vsel %vm1730_vm7, %v1704_v3, %v1416_v24  ;;  %v2427_v52 = vld [vmem:[%s2789_s21 + $0x13a] sm:$0xff] }
 0x1e8   : > { %1333 = vrot.lane.b32.xlu1 %v2392_v50, %s2733_s16  ;;  %1301 = vrot.lane.b32.xlu0 %v2376_v12, %s2733_s16  ;;  %v2411_v3 = vld [vmem:[%s2789_s21 + $0xba] sm:$0xff] }
 0x1e9   : > { %2551 = vmatprep.mubr.msk.f32.mxu0 %vm1763_vm8, %v1737_v38  ;;  %2575 = vmatprep.mubr.msk.f32.mxu1 %vm1763_vm8, %v1753_v48 }
 0x1ea   : > { %v4106_v53 = vpop.permute.xlu1 %941  ;;  %v4108_v6 = vpop.permute.xlu0 %909 }
 0x1ec   : > { %1459 = vrot.lane.b32.xlu1 %v2424_v19, %s2734_s23  ;;  %1427 = vrot.lane.b32.xlu0 %v2408_v20, %s2734_s23  ;;  %v1624_v19 = vsel %vm1598_vm3, %v3612_v1, %v4106_v53  ;;  %v1608_v20 = vsel %vm1598_vm3, %v3524_v13, %v4108_v6 }
 0x1ee   : > { %v1068_v45 = vpop.permute.xlu1 %1067  ;;  %v1036_v11 = vpop.permute.xlu0 %1035 }
 0x1ef   : > { %v1656_v25 = vsel %vm1631_vm4, %v1623_v28, %v1068_v45  ;;  %v1640_v42 = vsel %vm1631_vm4, %v1607_v34, %v1036_v11 }
 0x1f0   : > { %953 = vrot.lane.b32.xlu1 %v3994_v60, %s2730_s25  ;;  %921 = vrot.lane.b32.xlu0 %v3997_v9, %s2730_s25  ;;  %v2425_v60 = vld [vmem:[%s2789_s21 + $0x12a] sm:$0xff] }
 0x1f1   : > { %v2409_v9 = vld [vmem:[%s2789_s21 + $0xaa] sm:$0xff] }
 0x1f2   : > { %v1450_v40 = vpop.permute.xlu1 %1449  ;;  %v1418_v18 = vpop.permute.xlu0 %1417 }
 0x1f3   : > { %v1754_v8 = vsel %vm1730_vm7, %v1721_v31, %v1450_v40  ;;  %v1738_v5 = vsel %vm1730_vm7, %v1705_v41, %v1418_v18 }
 0x1f4   : > { %1079 = vrot.lane.b32.xlu1 %v4012_v61, %s2731_s17  ;;  %1047 = vrot.lane.b32.xlu0 %v4015_v35, %s2731_s17  ;;  %v2360_v35 = vld [vmem:[%s2789_s21 + $0x130] sm:$0xff] }
 0x1f5   : > { %2552 = vmatmul.mubr.msk.f32.gmra.mrb[6].mxu0 %vm1763_vm8, %v1738_v5  ;;  %2576 = vmatmul.mubr.msk.f32.gmra.mrb[6].mxu1 %vm1763_vm8, %v1754_v8 }
 0x1f6   : > { %v1070_v37 = vpop.permute.xlu1 %1069  ;;  %v1038_v16 = vpop.permute.xlu0 %1037 }
 0x1f7   : > { %v1657_v45 = vsel %vm1631_vm4, %v1624_v19, %v1070_v37  ;;  %v1641_v11 = vsel %vm1631_vm4, %v1608_v20, %v1038_v16 }
 0x1f8   : > { %1461 = vrot.lane.b32.xlu1 %v2425_v60, %s2734_s23  ;;  %1429 = vrot.lane.b32.xlu0 %v2409_v9, %s2734_s23 }
 0x1fa   : > { %v1196_v0 = vpop.permute.xlu1 %1195  ;;  %v1164_v61 = vpop.permute.xlu0 %1163 }
 0x1fb   : > { %v1689_v23 = vsel %vm1664_vm5, %v1656_v25, %v1196_v0  ;;  %v1673_v36 = vsel %vm1664_vm5, %v1640_v42, %v1164_v61 }
 0x1fc   : > { %1081 = vrot.lane.b32.xlu1 %v4051_v27, %s2731_s17  ;;  %1049 = vrot.lane.b32.xlu0 %v4054_v54, %s2731_s17  ;;  %v2393_v27 = vld [vmem:[%s2789_s21 + $0x131] sm:$0xff]  ;;  %s2161_s17 = sshll.u32 %s4500_s10, 5 }
 0x1fd   : > { %v2377_v54 = vld [vmem:[%s2789_s21 + $0xb1] sm:$0xff]  ;;  %s2159_s21 = sshll.u32 %s2709_s9, 3 }
 0x1fe   : > { %v1198_v43 = vpop.permute.xlu1 %1197  ;;  %v1166_v30 = vpop.permute.xlu0 %1165  ;;  %p161_p6 = scmp.lt.s32.totalorder %s2159_s21, 15 }
 0x1ff   : > { %v1690_v21 = vsel %vm1664_vm5, %v1657_v45, %v1198_v43  ;;  %v1674_v10 = vsel %vm1664_vm5, %v1641_v11, %v1166_v30 }
 0x200   : > { %1207 = vrot.lane.b32.xlu1 %v2360_v35, %s2732_s28  ;;  %1175 = vrot.lane.b32.xlu0 %v2344_v49, %s2732_s28  ;;  %s4502_s21 = smov (!%p161_p6, %s2159_s21), 15 }
 0x201   : > { %s2160_s25 = sshll.u32 %s4502_s21, 1 }
 0x202   : > { %v1324_v7 = vpop.permute.xlu1 %1323  ;;  %v1292_v51 = vpop.permute.xlu0 %1291  ;;  %s165_s24 = sadd.s32 %s2161_s17, %s2160_s25 }
 0x203   : > { %v1722_v2 = vsel %vm1697_vm6, %v1689_v23, %v1324_v7  ;;  %v1706_v55 = vsel %vm1697_vm6, %v1673_v36, %v1292_v51  ;;  %s2162_s9 = sshll.u32 %s165_s24, 3 }
 0x204   : > { %1209 = vrot.lane.b32.xlu1 %v2361_v26, %s2732_s28  ;;  %1177 = vrot.lane.b32.xlu0 %v2345_v33, %s2732_s28  ;;  %s4247_s28 = scalar_lea.vmem %s4342_s2, %s2162_s9 }
 0x206   : > { %v4154_v32 = vpop.permute.xlu1 %943  ;;  %v4156_v29 = vpop.permute.xlu0 %911 }
 0x207   : > { %v1625_v0 = vsel %vm1598_vm3, %v3628_v62, %v4154_v32  ;;  %v1609_v61 = vsel %vm1598_vm3, %v3540_v39, %v4156_v29 }
 0x208   : > { %1335 = vrot.lane.b32.xlu1 %v2393_v27, %s2733_s16  ;;  %1303 = vrot.lane.b32.xlu0 %v2377_v54, %s2733_s16 }
 0x20a   : > { %v1326_v15 = vpop.permute.xlu1 %1325  ;;  %v1294_v59 = vpop.permute.xlu0 %1293 }
 0x20b   : > { %v1723_v22 = vsel %vm1697_vm6, %v1690_v21, %v1326_v15  ;;  %v1707_v4 = vsel %vm1697_vm6, %v1674_v10, %v1294_v59  ;;  %v4480_v15 = vld [vmem:[#allocation35_spill] sm:$0xff] }
 0x20c   : > { %1337 = vrot.lane.b32.xlu1 %v2394_v57, %s2733_s16  ;;  %1305 = vrot.lane.b32.xlu0 %v2378_v46, %s2733_s16  ;;  %v4479_v57 = vld [vmem:[#allocation18_spill] sm:$0xff] }
 0x20e   : > { %v1452_v58 = vpop.permute.xlu1 %1451  ;;  %v1420_v56 = vpop.permute.xlu0 %1419 }
 0x20f   : > { %v1755_v50 = vsel %vm1730_vm7, %v1722_v2, %v1452_v58  ;;  %v1739_v12 = vsel %vm1730_vm7, %v1706_v55, %v1420_v56 }
 0x210   : > { %1463 = vrot.lane.b32.xlu1 %v2426_v44, %s2734_s23  ;;  %1431 = vrot.lane.b32.xlu0 %v2410_v63, %s2734_s23 }
 0x211   : > { %2554 = vmatprep.mubr.msk.f32.mxu0 %vm1763_vm8, %v1739_v12  ;;  %2578 = vmatprep.mubr.msk.f32.mxu1 %vm1763_vm8, %v1755_v50 }
 0x212   : > { %v946_v17 = vpop.permute.xlu1 %945  ;;  %v914_v24 = vpop.permute.xlu0 %913 }
 0x213   : > { %v1626_v46 = vsel %vm1598_vm3, %v4479_v57, %v946_v17  ;;  %v1610_v59 = vsel %vm1598_vm3, %v4480_v15, %v914_v24 }
 0x214   : > { %1465 = vrot.lane.b32.xlu1 %v2427_v52, %s2734_s23  ;;  %1433 = vrot.lane.b32.xlu0 %v2411_v3, %s2734_s23 }
 0x216   : > { %v1072_v48 = vpop.permute.xlu1 %1071  ;;  %v1040_v38 = vpop.permute.xlu0 %1039 }
 0x217   : > { %v1658_v35 = vsel %vm1631_vm4, %v1625_v0, %v1072_v48  ;;  %v1642_v49 = vsel %vm1631_vm4, %v1609_v61, %v1040_v38  ;;  %v4483_v0 = vld [vmem:[#allocation16_spill] sm:$0xff] }
 0x21a   : > { %v1454_v47 = vpop.permute.xlu1 %1453  ;;  %v1422_v14 = vpop.permute.xlu0 %1421 }
 0x21b   : > { %v1756_v1 = vsel %vm1730_vm7, %v1723_v22, %v1454_v47  ;;  %v1740_v53 = vsel %vm1730_vm7, %v1707_v4, %v1422_v14  ;;  %v4481_v22 = vld [vmem:[#allocation9_spill] sm:$0xff]  ;;  %v4482_v47 = vld [vmem:[#allocation36_spill] sm:$0xff] }
 0x21c   : > { %2555 = vmatmul.mubr.msk.f32.gmra.mrb[8].mxu0 %vm1763_vm8, %v1740_v53  ;;  %2579 = vmatmul.mubr.msk.f32.gmra.mrb[8].mxu1 %vm1763_vm8, %v1756_v1 }
 0x21e   : > { %v1074_v13 = vpop.permute.xlu1 %1073  ;;  %v1042_v6 = vpop.permute.xlu0 %1041 }
 0x21f   : > { %v1659_v28 = vsel %vm1631_vm4, %v1626_v46, %v1074_v13  ;;  %v1643_v34 = vsel %vm1631_vm4, %v1610_v59, %v1042_v6 }
 0x222   : > { %v1200_v31 = vpop.permute.xlu1 %1199  ;;  %v1168_v41 = vpop.permute.xlu0 %1167 }
 0x223   : > { %v1691_v43 = vsel %vm1664_vm5, %v1658_v35, %v1200_v31  ;;  %v1675_v30 = vsel %vm1664_vm5, %v1642_v49, %v1168_v41  ;;  %v4484_v35 = vld [vmem:[#allocation39_spill] sm:$0xff] }
 0x226   : > { %v1202_v40 = vpop.permute.xlu1 %1201  ;;  %v1170_v18 = vpop.permute.xlu0 %1169 }
 0x227   : > { %v1692_v25 = vsel %vm1664_vm5, %v1659_v28, %v1202_v40  ;;  %v1676_v42 = vsel %vm1664_vm5, %v1643_v34, %v1170_v18 }
 0x22a   : > { %v1328_v8 = vpop.permute.xlu1 %1327  ;;  %v1296_v5 = vpop.permute.xlu0 %1295 }
 0x22b   : > { %v1724_v26 = vsel %vm1697_vm6, %v1691_v43, %v1328_v8  ;;  %v1708_v33 = vsel %vm1697_vm6, %v1675_v30, %v1296_v5 }
 0x22e   : > { %v4204_v60 = vpop.permute.xlu1 %947  ;;  %v4206_v9 = vpop.permute.xlu0 %915 }
 0x22f   : > { %v1627_v4 = vsel %vm1598_vm3, %v4481_v22, %v4204_v60  ;;  %v1611_v14 = vsel %vm1598_vm3, %v4482_v47, %v4206_v9 }
 0x232   : > { %v1330_v37 = vpop.permute.xlu1 %1329  ;;  %v1298_v16 = vpop.permute.xlu0 %1297 }
 0x233   : > { %v1725_v23 = vsel %vm1697_vm6, %v1692_v25, %v1330_v37  ;;  %v1709_v36 = vsel %vm1697_vm6, %v1676_v42, %v1298_v16 }
 0x236   : > { %v1456_v7 = vpop.permute.xlu1 %1455  ;;  %v1424_v51 = vpop.permute.xlu0 %1423 }
 0x237   : > { %v1757_v62 = vsel %vm1730_vm7, %v1724_v26, %v1456_v7  ;;  %v1741_v27 = vsel %vm1730_vm7, %v1708_v33, %v1424_v51 }
 0x238   : > { %2557 = vmatprep.mubr.msk.f32.mxu0 %vm1763_vm8, %v1741_v27  ;;  %2581 = vmatprep.mubr.msk.f32.mxu1 %vm1763_vm8, %v1757_v62 }
 0x23a   : > { %v4224_v39 = vpop.permute.xlu1 %949  ;;  %v4226_v54 = vpop.permute.xlu0 %917 }
 0x23b   : > { %v1628_v61 = vsel %vm1598_vm3, %v4483_v0, %v4224_v39  ;;  %v1612_v49 = vsel %vm1598_vm3, %v4484_v35, %v4226_v54 }
 0x23e   : > { %v1076_v32 = vpop.permute.xlu1 %1075  ;;  %v1044_v29 = vpop.permute.xlu0 %1043 }
 0x23f   : > { %v1660_v1 = vsel %vm1631_vm4, %v1627_v4, %v1076_v32  ;;  %v1644_v53 = vsel %vm1631_vm4, %v1611_v14, %v1044_v29 }
 0x242   : > { %v1458_v44 = vpop.permute.xlu1 %1457  ;;  %v1426_v63 = vpop.permute.xlu0 %1425 }
 0x243   : > { %v1758_v2 = vsel %vm1730_vm7, %v1725_v23, %v1458_v44  ;;  %v1742_v55 = vsel %vm1730_vm7, %v1709_v36, %v1426_v63 }
 0x244   : > { %2558 = vmatmul.mubr.msk.f32.gmra.mrb[10].mxu0 %vm1763_vm8, %v1742_v55  ;;  %2582 = vmatmul.mubr.msk.f32.gmra.mrb[10].mxu1 %vm1763_vm8, %v1758_v2  ;;  %v4485_v2 = vld [vmem:[#allocation10_spill] sm:$0xff] }
 0x246   : > { %v1078_v58 = vpop.permute.xlu1 %1077  ;;  %v1046_v56 = vpop.permute.xlu0 %1045 }
 0x247   : > { %v1661_v43 = vsel %vm1631_vm4, %v1628_v61, %v1078_v58  ;;  %v1645_v30 = vsel %vm1631_vm4, %v1612_v49, %v1046_v56  ;;  %v4486_v58 = vld [vmem:[#allocation3_spill] sm:$0xff] }
 0x24a   : > { %v1204_v50 = vpop.permute.xlu1 %1203  ;;  %v1172_v12 = vpop.permute.xlu0 %1171 }
 0x24b   : > { %v1693_v13 = vsel %vm1664_vm5, %v1660_v1, %v1204_v50  ;;  %v1677_v6 = vsel %vm1664_vm5, %v1644_v53, %v1172_v12 }
 0x24e   : > { %v1206_v52 = vpop.permute.xlu1 %1205  ;;  %v1174_v3 = vpop.permute.xlu0 %1173 }
 0x24f   : > { %v1694_v26 = vsel %vm1664_vm5, %v1661_v43, %v1206_v52  ;;  %v1678_v33 = vsel %vm1664_vm5, %v1645_v30, %v1174_v3 }
 0x252   : > { %v1332_v17 = vpop.permute.xlu1 %1331  ;;  %v1300_v24 = vpop.permute.xlu0 %1299 }
 0x253   : > { %v1726_v31 = vsel %vm1697_vm6, %v1693_v13, %v1332_v17  ;;  %v1710_v41 = vsel %vm1697_vm6, %v1677_v6, %v1300_v24 }
 0x256   : > { %v952_v48 = vpop.permute.xlu1 %951  ;;  %v920_v38 = vpop.permute.xlu0 %919 }
 0x257   : > { %v1629_v55 = vsel %vm1598_vm3, %v4485_v2, %v952_v48  ;;  %v1613_v56 = vsel %vm1598_vm3, %v4486_v58, %v920_v38 }
 0x258   : > { %v2544_v19 = vpop.f32.mrb[0].mxu0  ;;  %v2568_v20 = vpop.f32.mrb[0].mxu1 }
 0x259   : > { %2022 = vst [vmem:[%s4247_s28 + $0x8] sm:$0xff] %v2544_v19  ;;  %2030 = vst [vmem:[%s4247_s28 + $0x48] sm:$0xff] %v2568_v20  ;;  %v1878_v45 = vpop.f32.mrb[1].mxu0  ;;  %v1950_v11 = vpop.f32.mrb[1].mxu1 }
 0x25a   : > { %2021 = vst [vmem:[%s4247_s28] sm:$0xff] %v1878_v45  ;;  %2029 = vst [vmem:[%s4247_s28 + $0x40] sm:$0xff] %v1950_v11  ;;  %v1334_v21 = vpop.permute.xlu1 %1333  ;;  %v1302_v10 = vpop.permute.xlu0 %1301  ;;  %v4487_v45 = vld [vmem:[#allocation17_spill] sm:$0xff]  ;;  %v4488_v11 = vld [vmem:[#allocation40_spill] sm:$0xff] }
 0x25b   : > { %v1727_v7 = vsel %vm1697_vm6, %v1694_v26, %v1334_v21  ;;  %v1711_v51 = vsel %vm1697_vm6, %v1678_v33, %v1302_v10 }
 0x25e   : > { %v1460_v40 = vpop.permute.xlu1 %1459  ;;  %v1428_v18 = vpop.permute.xlu0 %1427 }
 0x25f   : > { %v1759_v8 = vsel %vm1730_vm7, %v1726_v31, %v1460_v40  ;;  %v1743_v5 = vsel %vm1730_vm7, %v1710_v41, %v1428_v18 }
 0x260   : > { %2560 = vmatprep.mubr.msk.f32.mxu0 %vm1763_vm8, %v1743_v5  ;;  %2584 = vmatprep.mubr.msk.f32.mxu1 %vm1763_vm8, %v1759_v8 }
 0x262   : > { %v954_v60 = vpop.permute.xlu1 %953  ;;  %v922_v9 = vpop.permute.xlu0 %921 }
 0x263   : > { %v1630_v48 = vsel %vm1598_vm3, %v4487_v45, %v954_v60  ;;  %v1614_v38 = vsel %vm1598_vm3, %v4488_v11, %v922_v9 }
 0x266   : > { %v1080_v37 = vpop.permute.xlu1 %1079  ;;  %v1048_v16 = vpop.permute.xlu0 %1047 }
 0x267   : > { %v1662_v50 = vsel %vm1631_vm4, %v1629_v55, %v1080_v37  ;;  %v1646_v12 = vsel %vm1631_vm4, %v1613_v56, %v1048_v16 }
 0x26a   : > { %v1462_v62 = vpop.permute.xlu1 %1461  ;;  %v1430_v27 = vpop.permute.xlu0 %1429 }
 0x26b   : > { %v1760_v39 = vsel %vm1730_vm7, %v1727_v7, %v1462_v62  ;;  %v1744_v32 = vsel %vm1730_vm7, %v1711_v51, %v1430_v27 }
 0x26c   : > { %2561 = vmatmul.mubr.msk.f32.gmra.mrb[12].mxu0 %vm1763_vm8, %v1744_v32  ;;  %2585 = vmatmul.mubr.msk.f32.gmra.mrb[12].mxu1 %vm1763_vm8, %v1760_v39 }
 0x26e   : > { %v1082_v54 = vpop.permute.xlu1 %1081  ;;  %v1050_v29 = vpop.permute.xlu0 %1049 }
 0x26f   : > { %v1663_v22 = vsel %vm1631_vm4, %v1630_v48, %v1082_v54  ;;  %v1647_v4 = vsel %vm1631_vm4, %v1614_v38, %v1050_v29 }
 0x272   : > { %v1208_v57 = vpop.permute.xlu1 %1207  ;;  %v1176_v46 = vpop.permute.xlu0 %1175 }
 0x273   : > { %v1695_v52 = vsel %vm1664_vm5, %v1662_v50, %v1208_v57  ;;  %v1679_v3 = vsel %vm1664_vm5, %v1646_v12, %v1176_v46 }
 0x276   : > { %v1210_v15 = vpop.permute.xlu1 %1209  ;;  %v1178_v59 = vpop.permute.xlu0 %1177 }
 0x277   : > { %v1696_v47 = vsel %vm1664_vm5, %v1663_v22, %v1210_v15  ;;  %v1680_v14 = vsel %vm1664_vm5, %v1647_v4, %v1178_v59 }
 0x27a   : > { %v1336_v28 = vpop.permute.xlu1 %1335  ;;  %v1304_v34 = vpop.permute.xlu0 %1303 }
 0x27b   : > { %v1728_v17 = vsel %vm1697_vm6, %v1695_v52, %v1336_v28  ;;  %v1712_v24 = vsel %vm1697_vm6, %v1679_v3, %v1304_v34 }
 0x27c   : > { %v2547_v25 = vpop.f32.mrb[2].mxu0  ;;  %v2571_v42 = vpop.f32.mrb[2].mxu1 }
 0x27d   : > { %v1888_v23 = vpop.f32.mrb[3].mxu0  ;;  %v1960_v36 = vpop.f32.mrb[3].mxu1 }
 0x27e   : > { %v1338_v44 = vpop.permute.xlu1 %1337  ;;  %v1306_v63 = vpop.permute.xlu0 %1305 }
 0x27f   : > { %v1729_v1 = vsel %vm1697_vm6, %v1696_v47, %v1338_v44  ;;  %v1713_v53 = vsel %vm1697_vm6, %v1680_v14, %v1306_v63 }
 0x282   : > { %v1464_v19 = vpop.permute.xlu1 %1463  ;;  %v1432_v20 = vpop.permute.xlu0 %1431 }
 0x283   : > { %v1761_v21 = vsel %vm1730_vm7, %v1728_v17, %v1464_v19  ;;  %v1745_v10 = vsel %vm1730_vm7, %v1712_v24, %v1432_v20 }
 0x284   : > { %2563 = vmatprep.mubr.msk.f32.mxu0 %vm1763_vm8, %v1745_v10  ;;  %2587 = vmatprep.mubr.msk.f32.mxu1 %vm1763_vm8, %v1761_v21 }
 0x286   : > { %v1466_v13 = vpop.permute.xlu1 %1465  ;;  %v1434_v6 = vpop.permute.xlu0 %1433 }
 0x287   : > { %v1762_v31 = vsel %vm1730_vm7, %v1729_v1, %v1466_v13  ;;  %v1746_v41 = vsel %vm1730_vm7, %v1713_v53, %v1434_v6 }
 0x288   : > { %2564 = vmatmul.mubr.msk.f32.gmra.mrb[14].mxu0 %vm1763_vm8, %v1746_v41  ;;  %2588 = vmatmul.mubr.msk.f32.gmra.mrb[14].mxu1 %vm1763_vm8, %v1762_v31 }
 0x2a0   : > { %v2550_v40 = vpop.f32.mrb[4].mxu0  ;;  %v2574_v18 = vpop.f32.mrb[4].mxu1 }
 0x2a1   : > { %2024 = vst [vmem:[%s4247_s28 + $0x18] sm:$0xff] %v2550_v40  ;;  %2032 = vst [vmem:[%s4247_s28 + $0x58] sm:$0xff] %v2574_v18  ;;  %v1896_v8 = vpop.f32.mrb[5].mxu0  ;;  %v1968_v5 = vpop.f32.mrb[5].mxu1 }
 0x2a2   : > { %2023 = vst [vmem:[%s4247_s28 + $0x10] sm:$0xff] %v1896_v8  ;;  %2031 = vst [vmem:[%s4247_s28 + $0x50] sm:$0xff] %v1968_v5 }
 0x2c8   : > { %v2553_v60 = vpop.f32.mrb[6].mxu0  ;;  %v2577_v9 = vpop.f32.mrb[6].mxu1 }
 0x2c9   : > { %v1906_v37 = vpop.f32.mrb[7].mxu0  ;;  %v1978_v16 = vpop.f32.mrb[7].mxu1 }
 0x2ef   : > { %v2556_v0 = vpop.f32.mrb[8].mxu0  ;;  %v2580_v61 = vpop.f32.mrb[8].mxu1 }
 0x2f0   : > { %2026 = vst [vmem:[%s4247_s28 + $0x28] sm:$0xff] %v2556_v0  ;;  %2034 = vst [vmem:[%s4247_s28 + $0x68] sm:$0xff] %v2580_v61  ;;  %v1914_v35 = vpop.f32.mrb[9].mxu0  ;;  %v1986_v49 = vpop.f32.mrb[9].mxu1 }
 0x2f1   : > { %2025 = vst [vmem:[%s4247_s28 + $0x20] sm:$0xff] %v1914_v35  ;;  %2033 = vst [vmem:[%s4247_s28 + $0x60] sm:$0xff] %v1986_v49 }
 0x317   : > { %v2559_v43 = vpop.f32.mrb[10].mxu0  ;;  %v2583_v30 = vpop.f32.mrb[10].mxu1 }
 0x318   : > { %v1924_v26 = vpop.f32.mrb[11].mxu0  ;;  %v1996_v33 = vpop.f32.mrb[11].mxu1 }
 0x33f   : > { %v2562_v7 = vpop.f32.mrb[12].mxu0  ;;  %v2586_v51 = vpop.f32.mrb[12].mxu1 }
 0x340   : > { %2028 = vst [vmem:[%s4247_s28 + $0x38] sm:$0xff] %v2562_v7  ;;  %2036 = vst [vmem:[%s4247_s28 + $0x78] sm:$0xff] %v2586_v51  ;;  %v1932_v62 = vpop.f32.mrb[13].mxu0  ;;  %v2004_v27 = vpop.f32.mrb[13].mxu1 }
 0x341   : > { %2027 = vst [vmem:[%s4247_s28 + $0x30] sm:$0xff] %v1932_v62  ;;  %2035 = vst [vmem:[%s4247_s28 + $0x70] sm:$0xff] %v2004_v27 }
 0x35b   : > { %v2565_v39 = vpop.f32.mrb[14].mxu0  ;;  %v2589_v32 = vpop.f32.mrb[14].mxu1 }
 0x35c   : > { %v1942_v54 = vpop.f32.mrb[15].mxu0  ;;  %v2014_v29 = vpop.f32.mrb[15].mxu1 }
 0x35d PF: > { %s12_s13 = sadd.s32 1, %s2725_s13   ;;  %s4489_s9 = smov %s2717_s11 }
 0x35e   : > { %p9_p7 = scmp.ge.s32.totalorder %s12_s13, 6   ;;  %s4490_s10 = smov %s2721_s12 }
 0x35f   : > { %s4491_s11 = smov %s4494_s14  ;;  %s4492_s12 = smov %s4498_s15 }
 0x360   :  { %11 = sbr.rel (!%p9_p7) target bundleno = 3 (0x3), region = 67 }

</bundles_post_ra>
